<compile_context>
chip_gen: v5e
topology: v5e:2x2
jax: 0.10.0
libtpu: 0.0.40
codegen_flags: <defaults>
</compile_context>

<pallas_src>
import functools
import math

import jax
import jax.numpy as jnp
from jax import lax
from jax.experimental import pallas as pl
from jax.experimental.pallas import tpu as pltpu


# ----------------------------------------------------------------------------
# helpers
# ----------------------------------------------------------------------------
def _round_up(x, m):
    return ((x + m - 1) // m) * m


def _unroll_conv_matrix(w_oihw, in_shape, stride, padding):
    """Dense (C*H*W, OC*OH*OW) matrix of the conv's linear map.

    Input/output flattening is channel-first (PyTorch .view order).  Built
    once at parameter-init time (this is weight preprocessing, not forward
    compute), by pushing the identity basis through the convolution.
    """
    ic, H, W = in_shape
    eye = jnp.eye(ic * H * W, dtype=jnp.float32).reshape(ic * H * W, ic, H, W)
    out = lax.conv_general_dilated(
        eye, w_oihw, window_strides=(stride, stride),
        padding=[(padding, padding), (padding, padding)],
        dimension_numbers=("NCHW", "OIHW", "NCHW"))
    return out.reshape(ic * H * W, -1)


# ----------------------------------------------------------------------------
# Pallas kernel: the entire ConvNet forward, VMEM-resident
# ----------------------------------------------------------------------------
def _fused_convnet_kernel(x_ref, *refs, acts):
    """refs = (w_0, b_0, ..., w_{L-1}, b_{L-1}, o_ref).

    Weights bf16, biases f32, activations carried as bf16 between layers,
    accumulation + epilogue in f32.
    """
    o_ref = refs[-1]
    h = x_ref[...]                                   # (tm, K0p) bf16
    y = None
    for l, act in enumerate(acts):
        w = refs[2 * l][...]                         # (Kp, Np) bf16
        b = refs[2 * l + 1][...]                     # (1, Np)  f32
        y = jnp.dot(h, w, preferred_element_type=jnp.float32) + b
        if act == "leaky_relu":
            y = jnp.maximum(y, 0.01 * y)             # torch default slope 0.01
        elif act == "relu":
            y = jnp.maximum(y, 0.0)
        if l + 1 < len(acts):
            h = y.astype(jnp.bfloat16)               # next layer's MXU operand
    o_ref[...] = y.astype(o_ref.dtype)


def fused_forward(x_flat, weights, acts, n_out, tm=8):
    """act_L(... act_1(x @ W_1 + b_1) ... @ W_L + b_L) in one pallas_call."""
    N, K0 = x_flat.shape
    K0p = weights[0][0].shape[0]
    n_last_p = weights[-1][0].shape[1]
    Mp = _round_up(max(N, tm), tm)

    # Only per-call data movement: pad/cast the (tiny) input batch.
    xp = jnp.zeros((Mp, K0p), jnp.bfloat16).at[:N, :K0].set(
        x_flat.astype(jnp.bfloat16))

    args = [xp]
    in_specs = [pl.BlockSpec((tm, K0p), lambda i: (i, 0))]
    for (w, b) in weights:
        kp, np_ = w.shape
        args += [w, b]
        in_specs += [pl.BlockSpec((kp, np_), lambda i: (0, 0)),   # resident
                     pl.BlockSpec((1, np_), lambda i: (0, 0))]    # resident

    out = pl.pallas_call(
        functools.partial(_fused_convnet_kernel, acts=acts),
        out_shape=jax.ShapeDtypeStruct((Mp, n_last_p), jnp.float32),
        grid=(Mp // tm,),
        in_specs=in_specs,
        out_specs=pl.BlockSpec((tm, n_last_p), lambda i: (i, 0)),
        compiler_params=pltpu.CompilerParams(
            dimension_semantics=("parallel",)),   # shards batch tiles on v7x
    )(*args)
    return out[:N, :n_out]


# ----------------------------------------------------------------------------
# ConvNet forward (jitted Pallas path)
# ----------------------------------------------------------------------------
@functools.partial(jax.jit, static_argnames=("acts", "n_out", "squeeze_out"))
def convnet_forward(x_nchw, weights, *, acts, n_out, squeeze_out):
    x_flat = x_nchw.reshape(x_nchw.shape[0], -1)      # PyTorch (C,H,W) flatten
    out = fused_forward(x_flat, weights, acts, n_out)
    if squeeze_out:
        out = out[..., 0]
    return out


# ----------------------------------------------------------------------------
# parameter init (deterministic, PyTorch-like uniform fan-in init) +
# one-time conversion to padded bf16 GEMM layout
# ----------------------------------------------------------------------------
def init_params(key, input_shape, output_dim, layers):
    squeeze_out = output_dim == 0
    if squeeze_out:
        output_dim = 1

    conv_cfg = [
        (layers[0], input_shape[0], 8, 3, 4),   # conv1: k=8, s=3, p=4
        (layers[1], layers[0], 4, 2, 0),        # conv2: k=4, s=2, p=0
        (layers[2], layers[1], 2, 1, 0),        # conv3: k=2, s=1, p=0
    ]

    # conv output shapes (matches torch conv2d_out_shape with dilation=1)
    shapes = []
    cur = tuple(input_shape)
    for (oc, _, k, s, p) in conv_cfg:
        H = (cur[1] + 2 * p - k) // s + 1
        W = (cur[2] + 2 * p - k) // s + 1
        cur = (oc, H, W)
        shapes.append(cur)
    flat_dim = cur[0] * cur[1] * cur[2]

    fc_hidden = tuple(layers[3:])
    fc_dims = list(zip((flat_dim,) + fc_hidden, fc_hidden + (output_dim,)))

    keys = jax.random.split(key, 2 * len(conv_cfg) + 2 * len(fc_dims))
    ki = 0

    conv_raw = []
    for (oc, ic, k, s, p) in conv_cfg:
        bound = 1.0 / math.sqrt(ic * k * k)
        w = jax.random.uniform(keys[ki], (oc, ic, k, k), jnp.float32,
                               -bound, bound); ki += 1
        b = jax.random.uniform(keys[ki], (oc,), jnp.float32, -bound, bound); ki += 1
        conv_raw.append((w, b))

    fc_raw = []
    for (in_d, out_d) in fc_dims:
        bound = 1.0 / math.sqrt(in_d)
        w = jax.random.uniform(keys[ki], (out_d, in_d), jnp.float32,
                               -bound, bound); ki += 1
        b = jax.random.uniform(keys[ki], (out_d,), jnp.float32, -bound, bound); ki += 1
        fc_raw.append((w, b))

    # --- GEMM-form layers: unrolled conv matrices + FC weights (done ONCE) ---
    gemm, acts = [], []
    in_shape = tuple(input_shape)
    for (w, b), (_, _, _, s, p), out_shape in zip(conv_raw, conv_cfg, shapes):
        Wm = _unroll_conv_matrix(w, in_shape, s, p)        # (C*H*W, OC*OH*OW)
        b_full = jnp.repeat(b, out_shape[1] * out_shape[2])
        gemm.append((Wm, b_full)); acts.append("leaky_relu")
        in_shape = out_shape
    for l, (w, b) in enumerate(fc_raw):
        gemm.append((w.T, b))                              # (in_d, out_d)
        acts.append("relu" if l < len(fc_raw) - 1 else "none")

    # --- pre-pad to (8,128)-aligned shapes + pre-cast weights to bf16 ONCE ---
    weights = []
    for (Wm, b) in gemm:
        K, N = Wm.shape
        Kp, Np_ = _round_up(K, 128), _round_up(N, 128)
        wp = jnp.zeros((Kp, Np_), jnp.bfloat16).at[:K, :N].set(
            Wm.astype(jnp.bfloat16))
        bp = jnp.zeros((1, Np_), jnp.float32).at[0, :N].set(b)
        weights.append((wp, bp))
    # chain consistency: padded N of layer l == padded K of layer l+1
    for l in range(1, len(weights)):
        assert weights[l][0].shape[0] == weights[l - 1][0].shape[1]

    raw = {"conv": conv_raw, "conv_cfg": conv_cfg, "fc": fc_raw}
    return tuple(weights), tuple(acts), output_dim, squeeze_out, raw


# ----------------------------------------------------------------------------
# pure-JAX references (correctness checks only)
# ----------------------------------------------------------------------------
def ref_forward_bf16(x_nchw, weights, acts, n_out, squeeze_out):
    """Identical math to the Pallas path (bf16 operands, f32 accumulation)."""
    h = x_nchw.reshape(x_nchw.shape[0], -1)
    K0 = h.shape[1]
    K0p = weights[0][0].shape[0]
    h = jnp.pad(h, ((0, 0), (0, K0p - K0))).astype(jnp.bfloat16)
    y = None
    for (w, b), act in zip(weights, acts):
        y = jnp.dot(h, w, preferred_element_type=jnp.float32) + b
        if act == "leaky_relu":
            y = jnp.maximum(y, 0.01 * y)
        elif act == "relu":
            y = jnp.maximum(y, 0.0)
        h = y.astype(jnp.bfloat16)
    out = y[:, :n_out]
    if squeeze_out:
        out = out[..., 0]
    return out


def ref_forward_f32(x_nchw, raw, squeeze_out):
    """Independent full-f32 reference via lax.conv (PyTorch ConvNet semantics)."""
    x = x_nchw
    for (w, b), (_, _, _, s, p) in zip(raw["conv"], raw["conv_cfg"]):
        y = lax.conv_general_dilated(
            x, w, window_strides=(s, s), padding=[(p, p), (p, p)],
            dimension_numbers=("NCHW", "OIHW", "NCHW"))
        y = y + b.reshape(1, -1, 1, 1)
        x = jnp.maximum(y, 0.01 * y)
    x = x.reshape(x.shape[0], -1)
    fc = raw["fc"]
    for l, (w, b) in enumerate(fc):
        x = x @ w.T + b
        if l < len(fc) - 1:
            x = jnp.maximum(x, 0.0)
    if squeeze_out:
        x = x[..., 0]
    return x


if __name__ == "__main__":
    # input_shape=(4,16,16), layers=(8,16,16,32), output_dim=10, batch=2.
    # conv1: 16->6, conv2: 6->2, conv3: 2->1  =>  flat_dim = 16; FC: 16->32->10.
    input_shape = (4, 16, 16)
    layers = (8, 16, 16, 32)
    output_dim = 10
    batch = 2

    key = jax.random.PRNGKey(0)
    pkey, xkey = jax.random.split(key)
    weights, acts, out_dim, squeeze_out, raw = init_params(
        pkey, input_shape, output_dim, layers)
    x = jax.random.normal(xkey, (batch,) + input_shape, jnp.float32)

    out = jax.block_until_ready(
        convnet_forward(x, weights, acts=acts, n_out=out_dim,
                        squeeze_out=squeeze_out))
    want_shape = (batch,) if squeeze_out else (batch, out_dim)
    assert out.shape == want_shape, out.shape

    # Tight check vs a plain-JAX path with identical math (bf16 operands).
    ref_b = jax.block_until_ready(
        ref_forward_bf16(x, weights, acts, out_dim, squeeze_out))
    assert jnp.allclose(out, ref_b, rtol=1e-2, atol=1e-3), \
        "mismatch vs bf16-matched JAX reference"

    # Loose semantic check vs an independent full-f32 lax.conv reference.
    ref_f = jax.block_until_ready(ref_forward_f32(x, raw, squeeze_out))
    assert jnp.allclose(out, ref_f, rtol=5e-2, atol=5e-2), \
        "mismatch vs f32 lax.conv reference"

    print("KERNEL_OK")
</pallas_src>

<mosaic_0001>
module attributes {stable_mosaic.version = 11 : i64} {
  func.func @_fused_convnet_kernel(%arg0: i32, %arg1: memref<8x1024xbf16, #tpu.memory_space<vmem>>, %arg2: memref<1024x384xbf16, #tpu.memory_space<vmem>>, %arg3: memref<1x384xf32, #tpu.memory_space<vmem>>, %arg4: memref<384x128xbf16, #tpu.memory_space<vmem>>, %arg5: memref<1x128xf32, #tpu.memory_space<vmem>>, %arg6: memref<128x128xbf16, #tpu.memory_space<vmem>>, %arg7: memref<1x128xf32, #tpu.memory_space<vmem>>, %arg8: memref<128x128xbf16, #tpu.memory_space<vmem>>, %arg9: memref<1x128xf32, #tpu.memory_space<vmem>>, %arg10: memref<128x128xbf16, #tpu.memory_space<vmem>>, %arg11: memref<1x128xf32, #tpu.memory_space<vmem>>, %arg12: memref<8x128xf32, #tpu.memory_space<vmem>>) attributes {dimension_semantics = [#tpu.dimension_semantics<parallel>], iteration_bounds = array<i64: 1>, scalar_prefetch = 0 : i64, scratch_operands = 0 : i64, tpu.core_type = #tpu.core_type<tc>, window_params = [{transform_indices = @transform_0, window_bounds = array<i64: 8, 1024>}, {pipeline_mode = #tpu.pipeline_mode<synchronous>, transform_indices = @transform_1, window_bounds = array<i64: 1024, 384>}, {pipeline_mode = #tpu.pipeline_mode<synchronous>, transform_indices = @transform_2, window_bounds = array<i64: 1, 384>}, {pipeline_mode = #tpu.pipeline_mode<synchronous>, transform_indices = @transform_3, window_bounds = array<i64: 384, 128>}, {pipeline_mode = #tpu.pipeline_mode<synchronous>, transform_indices = @transform_4, window_bounds = array<i64: 1, 128>}, {pipeline_mode = #tpu.pipeline_mode<synchronous>, transform_indices = @transform_5, window_bounds = array<i64: 128, 128>}, {pipeline_mode = #tpu.pipeline_mode<synchronous>, transform_indices = @transform_6, window_bounds = array<i64: 1, 128>}, {pipeline_mode = #tpu.pipeline_mode<synchronous>, transform_indices = @transform_7, window_bounds = array<i64: 128, 128>}, {pipeline_mode = #tpu.pipeline_mode<synchronous>, transform_indices = @transform_8, window_bounds = array<i64: 1, 128>}, {pipeline_mode = #tpu.pipeline_mode<synchronous>, transform_indices = @transform_9, window_bounds = array<i64: 128, 128>}, {pipeline_mode = #tpu.pipeline_mode<synchronous>, transform_indices = @transform_10, window_bounds = array<i64: 1, 128>}, {transform_indices = @transform_11, window_bounds = array<i64: 8, 128>}]} {
    %c0 = arith.constant 0 : index
    %c0_0 = arith.constant 0 : index
    %0 = vector.load %arg1[%c0, %c0_0] : memref<8x1024xbf16, #tpu.memory_space<vmem>>, vector<8x1024xbf16>
    %c0_1 = arith.constant 0 : index
    %c0_2 = arith.constant 0 : index
    %1 = vector.load %arg2[%c0_1, %c0_2] : memref<1024x384xbf16, #tpu.memory_space<vmem>>, vector<1024x384xbf16>
    %c0_3 = arith.constant 0 : index
    %c0_4 = arith.constant 0 : index
    %2 = vector.load %arg3[%c0_3, %c0_4] : memref<1x384xf32, #tpu.memory_space<vmem>>, vector<1x384xf32>
    %cst = arith.constant dense<0.000000e+00> : vector<8x384xf32>
    %3 = tpu.matmul %0, %1, %cst {dimension_numbers = #tpu.dot_dimension_numbers<[1], [0], [0], [1], [0, 0, 1, 1], [], []>} : vector<8x1024xbf16>, vector<1024x384xbf16>, vector<8x384xf32> -> vector<8x384xf32>
    %4 = vector.broadcast %2 : vector<1x384xf32> to vector<8x384xf32>
    %5 = arith.addf %3, %4 : vector<8x384xf32>
    %cst_5 = arith.constant 0.00999999977 : f32
    %6 = vector.broadcast %cst_5 : f32 to vector<8x384xf32>
    %7 = arith.mulf %6, %5 : vector<8x384xf32>
    %8 = arith.maximumf %5, %7 : vector<8x384xf32>
    %9 = arith.truncf %8 : vector<8x384xf32> to vector<8x384xbf16>
    %c0_6 = arith.constant 0 : index
    %c0_7 = arith.constant 0 : index
    %10 = vector.load %arg4[%c0_6, %c0_7] : memref<384x128xbf16, #tpu.memory_space<vmem>>, vector<384x128xbf16>
    %c0_8 = arith.constant 0 : index
    %c0_9 = arith.constant 0 : index
    %11 = vector.load %arg5[%c0_8, %c0_9] : memref<1x128xf32, #tpu.memory_space<vmem>>, vector<1x128xf32>
    %cst_10 = arith.constant dense<0.000000e+00> : vector<8x128xf32>
    %12 = tpu.matmul %9, %10, %cst_10 {dimension_numbers = #tpu.dot_dimension_numbers<[1], [0], [0], [1], [0, 0, 1, 1], [], []>} : vector<8x384xbf16>, vector<384x128xbf16>, vector<8x128xf32> -> vector<8x128xf32>
    %13 = vector.broadcast %11 : vector<1x128xf32> to vector<8x128xf32>
    %14 = arith.addf %12, %13 : vector<8x128xf32>
    %cst_11 = arith.constant 0.00999999977 : f32
    %15 = vector.broadcast %cst_11 : f32 to vector<8x128xf32>
    %16 = arith.mulf %15, %14 : vector<8x128xf32>
    %17 = arith.maximumf %14, %16 : vector<8x128xf32>
    %18 = arith.truncf %17 : vector<8x128xf32> to vector<8x128xbf16>
    %c0_12 = arith.constant 0 : index
    %c0_13 = arith.constant 0 : index
    %19 = vector.load %arg6[%c0_12, %c0_13] : memref<128x128xbf16, #tpu.memory_space<vmem>>, vector<128x128xbf16>
    %c0_14 = arith.constant 0 : index
    %c0_15 = arith.constant 0 : index
    %20 = vector.load %arg7[%c0_14, %c0_15] : memref<1x128xf32, #tpu.memory_space<vmem>>, vector<1x128xf32>
    %cst_16 = arith.constant dense<0.000000e+00> : vector<8x128xf32>
    %21 = tpu.matmul %18, %19, %cst_16 {dimension_numbers = #tpu.dot_dimension_numbers<[1], [0], [0], [1], [0, 0, 1, 1], [], []>} : vector<8x128xbf16>, vector<128x128xbf16>, vector<8x128xf32> -> vector<8x128xf32>
    %22 = vector.broadcast %20 : vector<1x128xf32> to vector<8x128xf32>
    %23 = arith.addf %21, %22 : vector<8x128xf32>
    %cst_17 = arith.constant 0.00999999977 : f32
    %24 = vector.broadcast %cst_17 : f32 to vector<8x128xf32>
    %25 = arith.mulf %24, %23 : vector<8x128xf32>
    %26 = arith.maximumf %23, %25 : vector<8x128xf32>
    %27 = arith.truncf %26 : vector<8x128xf32> to vector<8x128xbf16>
    %c0_18 = arith.constant 0 : index
    %c0_19 = arith.constant 0 : index
    %28 = vector.load %arg8[%c0_18, %c0_19] : memref<128x128xbf16, #tpu.memory_space<vmem>>, vector<128x128xbf16>
    %c0_20 = arith.constant 0 : index
    %c0_21 = arith.constant 0 : index
    %29 = vector.load %arg9[%c0_20, %c0_21] : memref<1x128xf32, #tpu.memory_space<vmem>>, vector<1x128xf32>
    %cst_22 = arith.constant dense<0.000000e+00> : vector<8x128xf32>
    %30 = tpu.matmul %27, %28, %cst_22 {dimension_numbers = #tpu.dot_dimension_numbers<[1], [0], [0], [1], [0, 0, 1, 1], [], []>} : vector<8x128xbf16>, vector<128x128xbf16>, vector<8x128xf32> -> vector<8x128xf32>
    %31 = vector.broadcast %29 : vector<1x128xf32> to vector<8x128xf32>
    %32 = arith.addf %30, %31 : vector<8x128xf32>
    %cst_23 = arith.constant 0.000000e+00 : f32
    %33 = vector.broadcast %cst_23 : f32 to vector<8x128xf32>
    %34 = arith.maximumf %32, %33 : vector<8x128xf32>
    %35 = arith.truncf %34 : vector<8x128xf32> to vector<8x128xbf16>
    %c0_24 = arith.constant 0 : index
    %c0_25 = arith.constant 0 : index
    %36 = vector.load %arg10[%c0_24, %c0_25] : memref<128x128xbf16, #tpu.memory_space<vmem>>, vector<128x128xbf16>
    %c0_26 = arith.constant 0 : index
    %c0_27 = arith.constant 0 : index
    %37 = vector.load %arg11[%c0_26, %c0_27] : memref<1x128xf32, #tpu.memory_space<vmem>>, vector<1x128xf32>
    %cst_28 = arith.constant dense<0.000000e+00> : vector<8x128xf32>
    %38 = tpu.matmul %35, %36, %cst_28 {dimension_numbers = #tpu.dot_dimension_numbers<[1], [0], [0], [1], [0, 0, 1, 1], [], []>} : vector<8x128xbf16>, vector<128x128xbf16>, vector<8x128xf32> -> vector<8x128xf32>
    %39 = vector.broadcast %37 : vector<1x128xf32> to vector<8x128xf32>
    %40 = arith.addf %38, %39 : vector<8x128xf32>
    %c0_29 = arith.constant 0 : index
    %c0_30 = arith.constant 0 : index
    %41 = vector.load %arg12[%c0_29, %c0_30] : memref<8x128xf32, #tpu.memory_space<vmem>>, vector<8x128xf32>
    tpu.vector_store %arg12[%c0_29, %c0_30], %40 {strides = array<i32>} : memref<8x128xf32, #tpu.memory_space<vmem>>, vector<8x128xf32>,
    return
  }
  func.func @transform_0(%arg0: i32) -> (i32, i32) {
    %c0_i32 = arith.constant 0 : i32
    %c0_i32_0 = arith.constant 0 : i32
    return %arg0, %c0_i32 : i32, i32
  }
  func.func @transform_1(%arg0: i32) -> (i32, i32) {
    %c0_i32 = arith.constant 0 : i32
    %c0_i32_0 = arith.constant 0 : i32
    %c0_i32_1 = arith.constant 0 : i32
    return %c0_i32, %c0_i32_0 : i32, i32
  }
  func.func @transform_2(%arg0: i32) -> (i32, i32) {
    %c0_i32 = arith.constant 0 : i32
    %c0_i32_0 = arith.constant 0 : i32
    %c0_i32_1 = arith.constant 0 : i32
    return %c0_i32, %c0_i32_0 : i32, i32
  }
  func.func @transform_3(%arg0: i32) -> (i32, i32) {
    %c0_i32 = arith.constant 0 : i32
    %c0_i32_0 = arith.constant 0 : i32
    %c0_i32_1 = arith.constant 0 : i32
    return %c0_i32, %c0_i32_0 : i32, i32
  }
  func.func @transform_4(%arg0: i32) -> (i32, i32) {
    %c0_i32 = arith.constant 0 : i32
    %c0_i32_0 = arith.constant 0 : i32
    %c0_i32_1 = arith.constant 0 : i32
    return %c0_i32, %c0_i32_0 : i32, i32
  }
  func.func @transform_5(%arg0: i32) -> (i32, i32) {
    %c0_i32 = arith.constant 0 : i32
    %c0_i32_0 = arith.constant 0 : i32
    %c0_i32_1 = arith.constant 0 : i32
    return %c0_i32, %c0_i32_0 : i32, i32
  }
  func.func @transform_6(%arg0: i32) -> (i32, i32) {
    %c0_i32 = arith.constant 0 : i32
    %c0_i32_0 = arith.constant 0 : i32
    %c0_i32_1 = arith.constant 0 : i32
    return %c0_i32, %c0_i32_0 : i32, i32
  }
  func.func @transform_7(%arg0: i32) -> (i32, i32) {
    %c0_i32 = arith.constant 0 : i32
    %c0_i32_0 = arith.constant 0 : i32
    %c0_i32_1 = arith.constant 0 : i32
    return %c0_i32, %c0_i32_0 : i32, i32
  }
  func.func @transform_8(%arg0: i32) -> (i32, i32) {
    %c0_i32 = arith.constant 0 : i32
    %c0_i32_0 = arith.constant 0 : i32
    %c0_i32_1 = arith.constant 0 : i32
    return %c0_i32, %c0_i32_0 : i32, i32
  }
  func.func @transform_9(%arg0: i32) -> (i32, i32) {
    %c0_i32 = arith.constant 0 : i32
    %c0_i32_0 = arith.constant 0 : i32
    %c0_i32_1 = arith.constant 0 : i32
    return %c0_i32, %c0_i32_0 : i32, i32
  }
  func.func @transform_10(%arg0: i32) -> (i32, i32) {
    %c0_i32 = arith.constant 0 : i32
    %c0_i32_0 = arith.constant 0 : i32
    %c0_i32_1 = arith.constant 0 : i32
    return %c0_i32, %c0_i32_0 : i32, i32
  }
  func.func @transform_11(%arg0: i32) -> (i32, i32) {
    %c0_i32 = arith.constant 0 : i32
    %c0_i32_0 = arith.constant 0 : i32
    return %arg0, %c0_i32 : i32, i32
  }
}

</mosaic_0001>

<bundles_post_ra>
// kernel: convnet_forward.1
= control target key start
LH: loop header
LB: loop body
LE: loop exit
PB: predicated region body
PF: predicated region fallthrough
CT: control target
= control target key end

     0   :  { %16 = vsyncpa [#allocation3], 0  ;;  %s3753_s0 = inlined_call_operand.vmem [shape: bf16[8,1024], index: 0, kind: input, shape index: {}]   ;;  %s3754_s1 = inlined_call_operand.hbm [shape: bf16[1024,384], index: 1, kind: input, shape index: {}]   ;;  %s3755_s2 = inlined_call_operand.vmem [shape: f32[1,384], index: 2, kind: input, shape index: {}]   ;;  %s3756_s3 = inlined_call_operand.vmem [shape: bf16[384,128], index: 3, kind: input, shape index: {}]   ;;  %s3757_s4 = inlined_call_operand.vmem [shape: f32[1,128], index: 4, kind: input, shape index: {}]   ;;  %s3758_s5 = inlined_call_operand.vmem [shape: bf16[128,128], index: 5, kind: input, shape index: {}]   ;;  %s3759_s6 = inlined_call_operand.vmem [shape: f32[1,128], index: 6, kind: input, shape index: {}]   ;;  %s3760_s7 = inlined_call_operand.hbm [shape: bf16[128,128], index: 7, kind: input, shape index: {}]   ;;  %s3761_s8 = inlined_call_operand.vmem [shape: f32[1,128], index: 8, kind: input, shape index: {}]   ;;  %s3762_s9 = inlined_call_operand.hbm [shape: bf16[128,128], index: 9, kind: input, shape index: {}]   ;;  %s3763_s10 = inlined_call_operand.vmem [shape: f32[1,128], index: 10, kind: input, shape index: {}]   ;;  %s3764_s11 = inlined_call_operand.vmem [shape: f32[8,128], index: 11, kind: output, shape index: {}]  }
   0x1   :  { %17 = vsyncpa [#allocation5], 0  ;;  %s47_s19 = sshll.u32 %s3760_s7, 4  ;;  %s3506_s20 = smov [#allocation4]   ;;  %s48_s19 = int_to_ptr.hbm [resolvable:$true] %s47_s19 }
   0x2   :  { %s49_s21 = sshll.u32 %s3506_s20, 4  ;;  %s24_s24 = sshll.u32 %s3754_s1, 4  ;;  %s50_s21 = int_to_ptr.vmem [resolvable:$true] %s49_s21  ;;  %s25_s24 = int_to_ptr.hbm [resolvable:$true] %s24_s24 }
   0x3   :  { %s3507_s25 = smov 64   ;;  %s3508_s26 = smov 4  }
   0x4   :  { %55 = dma.hbm_to_vmem [thread:$0]  %s48_s19, 1024, %s50_s21, [#allocation5], %s3507_s25, %s3507_s25, %s3508_s26  }
   0x5   :  { %s3509_s27 = smov [#allocation2]   ;;  %s3510_s29 = smov 192  }
   0x6   :  { %s26_s28 = sshll.u32 %s3509_s27, 4  ;;  %s3511_s30 = smov 12   ;;  %s27_s28 = int_to_ptr.vmem [resolvable:$true] %s26_s28 }
   0x7   :  { %32 = dma.hbm_to_vmem [thread:$0]  %s25_s24, 24576, %s27_s28, [#allocation3], %s3510_s29, %s3510_s29, %s3511_s30  }
   0x8   :  { %s62_s13 = sshll.u32 %s3762_s9, 4  ;;  %s3512_s14 = smov [#allocation6]   ;;  %s63_s13 = int_to_ptr.hbm [resolvable:$true] %s62_s13 }
   0x9   :  { %s64_s15 = sshll.u32 %s3512_s14, 4  ;;  %s65_s15 = int_to_ptr.vmem [resolvable:$true] %s64_s15 }
   0xa   :  { %70 = dma.hbm_to_vmem [thread:$0]  %s63_s13, 1024, %s65_s15, [#allocation5], %s3507_s25, %s3507_s25, %s3508_s26  }
   0xb   :  { %3502 = dma.done.wait [#allocation3], 24576  }
   0xc   :  { %3503 = vsyncadd [#allocation3], 4294942720 }
   0xd   :  { %3504 = dma.done.wait [#allocation5], 2048  }
   0xe   :  { %3505 = vsyncadd [#allocation5], 4294965248  ;;  %v2305_v0 = vld [vmem:[#allocation2 + $0xa8] sm:$0xf]  ;;  %v3201_v1 = vld [vmem:[#allocation2 + $0xb0] sm:$0xf0] }
   0xf   :  { %v2401_v2 = vld [vmem:[#allocation2 + $0x168] sm:$0xf]  ;;  %v2306_v3 = vor.u32 %v3201_v1, %v2305_v0  ;;  %v3225_v4 = vld [vmem:[#allocation2 + $0x170] sm:$0xf0]  ;;  %v2293_v11 = vld [vmem:[#allocation2 + $0x90] sm:$0xf] }
  0x10   :  { %v2497_v5 = vld [vmem:[#allocation2 + $0x228] sm:$0xf]  ;;  %v3249_v6 = vld [vmem:[#allocation2 + $0x230] sm:$0xf0]  ;;  %v2402_v7 = vor.u32 %v3225_v4, %v2401_v2  ;;  %v3198_v13 = vld [vmem:[#allocation2 + $0x98] sm:$0xf0] }
  0x11   :  { %v2498_v8 = vor.u32 %v3249_v6, %v2497_v5  ;;  %v2593_v9 = vld [vmem:[#allocation2 + $0x2e8] sm:$0xf]  ;;  %v3273_v10 = vld [vmem:[#allocation2 + $0x2f0] sm:$0xf0]  ;;  %1405 = vmatpush.bf16.msra.mxu0 %v2306_v3  ;;  %v2389_v14 = vld [vmem:[#allocation2 + $0x150] sm:$0xf]  ;;  %v2294_v16 = vor.u32 %v3198_v13, %v2293_v11 }
  0x12   :  { %v2594_v12 = vor.u32 %v3273_v10, %v2593_v9  ;;  %v3222_v15 = vld [vmem:[#allocation2 + $0x158] sm:$0xf0]  ;;  %1418 = vmatpush.bf16.msra.mxu1 %v2402_v7  ;;  %v2485_v18 = vld [vmem:[#allocation2 + $0x210] sm:$0xf]  ;;  %v2281_v23 = vld [vmem:[#allocation2 + $0x78] sm:$0xf] }
  0x13   :  { %1431 = vmatpush.bf16.msra.mxu2 %v2498_v8  ;;  %v2390_v17 = vor.u32 %v3222_v15, %v2389_v14  ;;  %v3246_v19 = vld [vmem:[#allocation2 + $0x218] sm:$0xf0]  ;;  %v2581_v20 = vld [vmem:[#allocation2 + $0x2d0] sm:$0xf]  ;;  %v3195_v24 = vld [vmem:[#allocation2 + $0x80] sm:$0xf0] }
  0x14   :  { %1444 = vmatpush.bf16.msra.mxu3 %v2594_v12  ;;  %v2486_v21 = vor.u32 %v3246_v19, %v2485_v18  ;;  %v3270_v22 = vld [vmem:[#allocation2 + $0x2d8] sm:$0xf0]  ;;  %v2377_v26 = vld [vmem:[#allocation2 + $0x138] sm:$0xf]  ;;  %v3219_v27 = vld [vmem:[#allocation2 + $0x140] sm:$0xf0]  ;;  %v2282_v29 = vor.u32 %v3195_v24, %v2281_v23 }
  0x15   :  { %v2582_v25 = vor.u32 %v3270_v22, %v2581_v20  ;;  %v2473_v28 = vld [vmem:[#allocation2 + $0x1f8] sm:$0xf]  ;;  %1406 = vmatpush.bf16.msra.mxu0 %v2294_v16  ;;  %v3243_v30 = vld [vmem:[#allocation2 + $0x200] sm:$0xf0]  ;;  %v2378_v33 = vor.u32 %v3219_v27, %v2377_v26  ;;  %v2269_v35 = vld [vmem:[#allocation2 + $0x60] sm:$0xf] }
  0x16   :  { %v2569_v31 = vld [vmem:[#allocation2 + $0x2b8] sm:$0xf]  ;;  %v3267_v32 = vld [vmem:[#allocation2 + $0x2c0] sm:$0xf0]  ;;  %1419 = vmatpush.bf16.msra.mxu1 %v2390_v17  ;;  %v2474_v34 = vor.u32 %v3243_v30, %v2473_v28  ;;  %v3192_v36 = vld [vmem:[#allocation2 + $0x68] sm:$0xf0] }
  0x17   :  { %1432 = vmatpush.bf16.msra.mxu2 %v2486_v21  ;;  %v2365_v37 = vld [vmem:[#allocation2 + $0x120] sm:$0xf]  ;;  %v2570_v38 = vor.u32 %v3267_v32, %v2569_v31  ;;  %v3216_v39 = vld [vmem:[#allocation2 + $0x128] sm:$0xf0]  ;;  %v2270_v44 = vor.u32 %v3192_v36, %v2269_v35  ;;  %v2257_v47 = vld [vmem:[#allocation2 + $0x48] sm:$0xf] }
  0x18   :  { %1445 = vmatpush.bf16.msra.mxu3 %v2582_v25  ;;  %v2461_v40 = vld [vmem:[#allocation2 + $0x1e0] sm:$0xf]  ;;  %v3240_v41 = vld [vmem:[#allocation2 + $0x1e8] sm:$0xf0]  ;;  %v2366_v45 = vor.u32 %v3216_v39, %v2365_v37  ;;  %v3189_v48 = vld [vmem:[#allocation2 + $0x50] sm:$0xf0] }
  0x19   :  { %v2557_v42 = vld [vmem:[#allocation2 + $0x2a0] sm:$0xf]  ;;  %v3264_v43 = vld [vmem:[#allocation2 + $0x2a8] sm:$0xf0]  ;;  %1407 = vmatpush.bf16.msra.mxu0 %v2282_v29  ;;  %v2462_v46 = vor.u32 %v3240_v41, %v2461_v40  ;;  %v2353_v49 = vld [vmem:[#allocation2 + $0x108] sm:$0xf]  ;;  %v2258_v56 = vor.u32 %v3189_v48, %v2257_v47 }
  0x1a   :  { %1420 = vmatpush.bf16.msra.mxu1 %v2378_v33  ;;  %v2558_v50 = vor.u32 %v3264_v43, %v2557_v42  ;;  %v3213_v51 = vld [vmem:[#allocation2 + $0x110] sm:$0xf0]  ;;  %v2449_v52 = vld [vmem:[#allocation2 + $0x1c8] sm:$0xf]  ;;  %v2245_v59 = vld [vmem:[#allocation2 + $0x30] sm:$0xf] }
  0x1b   :  { %1433 = vmatpush.bf16.msra.mxu2 %v2474_v34  ;;  %v3237_v53 = vld [vmem:[#allocation2 + $0x1d0] sm:$0xf0]  ;;  %v2545_v54 = vld [vmem:[#allocation2 + $0x288] sm:$0xf]  ;;  %v2354_v57 = vor.u32 %v3213_v51, %v2353_v49  ;;  %v3186_v60 = vld [vmem:[#allocation2 + $0x38] sm:$0xf0] }
  0x1c   :  { %1446 = vmatpush.bf16.msra.mxu3 %v2570_v38  ;;  %v3261_v55 = vld [vmem:[#allocation2 + $0x290] sm:$0xf0]  ;;  %v2450_v58 = vor.u32 %v3237_v53, %v2449_v52  ;;  %v2341_v61 = vld [vmem:[#allocation2 + $0xf0] sm:$0xf]  ;;  %v3210_v63 = vld [vmem:[#allocation2 + $0xf8] sm:$0xf0]  ;;  %v2246_v4 = vor.u32 %v3186_v60, %v2245_v59 }
  0x1d   :  { %1408 = vmatpush.bf16.msra.mxu0 %v2270_v44  ;;  %v2546_v62 = vor.u32 %v3261_v55, %v2545_v54  ;;  %v2437_v0 = vld [vmem:[#allocation2 + $0x1b0] sm:$0xf]  ;;  %v3234_v1 = vld [vmem:[#allocation2 + $0x1b8] sm:$0xf0]  ;;  %v2342_v5 = vor.u32 %v3210_v63, %v2341_v61  ;;  %v2233_v7 = vld [vmem:[#allocation2 + $0x18] sm:$0xf] }
  0x1e   :  { %1421 = vmatpush.bf16.msra.mxu1 %v2366_v45  ;;  %v2533_v2 = vld [vmem:[#allocation2 + $0x270] sm:$0xf]  ;;  %v3258_v3 = vld [vmem:[#allocation2 + $0x278] sm:$0xf0]  ;;  %v2438_v6 = vor.u32 %v3234_v1, %v2437_v0  ;;  %v3183_v8 = vld [vmem:[#allocation2 + $0x20] sm:$0xf0] }
  0x1f   :  { %1434 = vmatpush.bf16.msra.mxu2 %v2462_v46  ;;  %v2329_v9 = vld [vmem:[#allocation2 + $0xd8] sm:$0xf]  ;;  %v2534_v10 = vor.u32 %v3258_v3, %v2533_v2  ;;  %v3207_v11 = vld [vmem:[#allocation2 + $0xe0] sm:$0xf0]  ;;  %v2234_v16 = vor.u32 %v3183_v8, %v2233_v7  ;;  %v2221_v17 = vld [vmem:[#allocation2] sm:$0xf] }
  0x20   :  { %1447 = vmatpush.bf16.msra.mxu3 %v2558_v50  ;;  %v2425_v12 = vld [vmem:[#allocation2 + $0x198] sm:$0xf]  ;;  %v3231_v13 = vld [vmem:[#allocation2 + $0x1a0] sm:$0xf0]  ;;  %v3180_v18 = vld [vmem:[#allocation2 + $0x8] sm:$0xf0]  ;;  %v2330_v19 = vor.u32 %v3207_v11, %v2329_v9 }
  0x21   :  { %1409 = vmatpush.bf16.msra.mxu0 %v2258_v56  ;;  %v2521_v14 = vld [vmem:[#allocation2 + $0x258] sm:$0xf]  ;;  %v3255_v15 = vld [vmem:[#allocation2 + $0x260] sm:$0xf0]  ;;  %v2426_v20 = vor.u32 %v3231_v13, %v2425_v12  ;;  %v2317_v21 = vld [vmem:[#allocation2 + $0xc0] sm:$0xf]  ;;  %v2222_v31 = vor.u32 %v3180_v18, %v2221_v17 }
  0x22   :  { %1422 = vmatpush.bf16.msra.mxu1 %v2354_v57  ;;  %v3204_v22 = vld [vmem:[#allocation2 + $0xc8] sm:$0xf0]  ;;  %v2413_v23 = vld [vmem:[#allocation2 + $0x180] sm:$0xf]  ;;  %v2522_v24 = vor.u32 %v3255_v15, %v2521_v14  ;;  %v2689_v28 = vld [vmem:[#allocation2 + $0x3a8] sm:$0xf] }
  0x23   :  { %1435 = vmatpush.bf16.msra.mxu2 %v2450_v58  ;;  %v3228_v25 = vld [vmem:[#allocation2 + $0x188] sm:$0xf0]  ;;  %v2509_v26 = vld [vmem:[#allocation2 + $0x240] sm:$0xf]  ;;  %v3297_v29 = vld [vmem:[#allocation2 + $0x3b0] sm:$0xf0]  ;;  %v2318_v35 = vor.u32 %v3204_v22, %v2317_v21 }
  0x24   :  { %1448 = vmatpush.bf16.msra.mxu3 %v2546_v62  ;;  %v3252_v27 = vld [vmem:[#allocation2 + $0x248] sm:$0xf0]  ;;  %v2785_v30 = vld [vmem:[#allocation2 + $0x468] sm:$0xf]  ;;  %v3321_v32 = vld [vmem:[#allocation2 + $0x470] sm:$0xf0]  ;;  %v2414_v36 = vor.u32 %v3228_v25, %v2413_v23  ;;  %v2690_v40 = vor.u32 %v3297_v29, %v2689_v28 }
  0x25   :  { %1410 = vmatpush.bf16.msra.mxu0 %v2246_v4  ;;  %v2881_v33 = vld [vmem:[#allocation2 + $0x528] sm:$0xf]  ;;  %v3345_v34 = vld [vmem:[#allocation2 + $0x530] sm:$0xf0]  ;;  %v2510_v39 = vor.u32 %v3252_v27, %v2509_v26  ;;  %v2786_v41 = vor.u32 %v3321_v32, %v2785_v30  ;;  %v2677_v43 = vld [vmem:[#allocation2 + $0x390] sm:$0xf] }
  0x26   :  { %1423 = vmatpush.bf16.msra.mxu1 %v2342_v5  ;;  %v2977_v37 = vld [vmem:[#allocation2 + $0x5e8] sm:$0xf]  ;;  %v3369_v38 = vld [vmem:[#allocation2 + $0x5f0] sm:$0xf0]  ;;  %v2882_v42 = vor.u32 %v3345_v34, %v2881_v33  ;;  %v3294_v44 = vld [vmem:[#allocation2 + $0x398] sm:$0xf0] }
  0x27   :  { %1436 = vmatpush.bf16.msra.mxu2 %v2438_v6  ;;  %v2773_v45 = vld [vmem:[#allocation2 + $0x450] sm:$0xf]  ;;  %v2978_v46 = vor.u32 %v3369_v38, %v2977_v37  ;;  %v3318_v47 = vld [vmem:[#allocation2 + $0x458] sm:$0xf0]  ;;  %v2678_v52 = vor.u32 %v3294_v44, %v2677_v43  ;;  %v2665_v53 = vld [vmem:[#allocation2 + $0x378] sm:$0xf] }
  0x28   :  { %1449 = vmatpush.bf16.msra.mxu3 %v2534_v10  ;;  %v2869_v48 = vld [vmem:[#allocation2 + $0x510] sm:$0xf]  ;;  %v3342_v49 = vld [vmem:[#allocation2 + $0x518] sm:$0xf0]  ;;  %v3291_v54 = vld [vmem:[#allocation2 + $0x380] sm:$0xf0]  ;;  %v2774_v55 = vor.u32 %v3318_v47, %v2773_v45 }
  0x29   :  { %1411 = vmatpush.bf16.msra.mxu0 %v2234_v16  ;;  %v2965_v50 = vld [vmem:[#allocation2 + $0x5d0] sm:$0xf]  ;;  %v3366_v51 = vld [vmem:[#allocation2 + $0x5d8] sm:$0xf0]  ;;  %v2870_v56 = vor.u32 %v3342_v49, %v2869_v48  ;;  %v2761_v57 = vld [vmem:[#allocation2 + $0x438] sm:$0xf]  ;;  %v2666_v6 = vor.u32 %v3291_v54, %v2665_v53 }
  0x2a   :  { %1424 = vmatpush.bf16.msra.mxu1 %v2330_v19  ;;  %v3315_v58 = vld [vmem:[#allocation2 + $0x440] sm:$0xf0]  ;;  %v86_v59 = vld [vmem:[%s3753_s0 + $0x8] sm:$0xff]  ;;  %v2966_v60 = vor.u32 %v3366_v51, %v2965_v50  ;;  %v2857_v61 = vld [vmem:[#allocation2 + $0x4f8] sm:$0xf] }
  0x2b   :  { %1437 = vmatpush.bf16.msra.mxu2 %v2426_v20  ;;  %v3339_v62 = vld [vmem:[#allocation2 + $0x500] sm:$0xf0]  ;;  %v359_v63 = vunpack.c.l.b16 %v86_v59  ;;  %v360_v1 = vunpack.c.h.b16 %v86_v59  ;;  %v2953_v2 = vld [vmem:[#allocation2 + $0x5b8] sm:$0xf]  ;;  %v2762_v9 = vor.u32 %v3315_v58, %v2761_v57  ;;  %v2653_v11 = vld [vmem:[#allocation2 + $0x360] sm:$0xf] }
  0x2c   :  { %1450 = vmatpush.bf16.msra.mxu3 %v2522_v24  ;;  %v85_v0 = vld [vmem:[%s3753_s0] sm:$0xff]  ;;  %v2858_v10 = vor.u32 %v3339_v62, %v2857_v61  ;;  %v3288_v12 = vld [vmem:[#allocation2 + $0x368] sm:$0xf0]  ;;  %v2641_v25 = vld [vmem:[#allocation2 + $0x348] sm:$0xf] }
  0x2d   :  { %1412 = vmatpush.bf16.msra.mxu0 %v2222_v31  ;;  %v3363_v3 = vld [vmem:[#allocation2 + $0x5c0] sm:$0xf0]  ;;  %v357_v4 = vunpack.c.l.b16 %v85_v0  ;;  %v358_v5 = vunpack.c.h.b16 %v85_v0  ;;  %v3588_v7 = vpack.c.b16 %v359_v63, %v359_v63  ;;  %v3590_v8 = vpack.c.b16 %v360_v1, %v360_v1  ;;  %v2749_v13 = vld [vmem:[#allocation2 + $0x420] sm:$0xf]  ;;  %v3312_v16 = vld [vmem:[#allocation2 + $0x428] sm:$0xf0] }
  0x2e   :  { %1425 = vmatpush.bf16.msra.mxu1 %v2318_v35  ;;  %v2954_v15 = vor.u32 %v3363_v3, %v2953_v2  ;;  %v2845_v17 = vld [vmem:[#allocation2 + $0x4e0] sm:$0xf]  ;;  %v3336_v18 = vld [vmem:[#allocation2 + $0x4e8] sm:$0xf0]  ;;  %v2654_v22 = vor.u32 %v3288_v12, %v2653_v11  ;;  %v2750_v23 = vor.u32 %v3312_v16, %v2749_v13  ;;  %v3285_v26 = vld [vmem:[#allocation2 + $0x350] sm:$0xf0] }
  0x2f   :  { %1438 = vmatpush.bf16.msra.mxu2 %v2414_v36  ;;  %v3592_v14 = vpack.c.b16 %v357_v4, %v357_v4  ;;  %v3595_v19 = vpack.c.b16 %v358_v5, %v358_v5  ;;  %v2941_v20 = vld [vmem:[#allocation2 + $0x5a0] sm:$0xf]  ;;  %v3360_v21 = vld [vmem:[#allocation2 + $0x5a8] sm:$0xf0]  ;;  %v2846_v24 = vor.u32 %v3336_v18, %v2845_v17  ;;  %v2737_v27 = vld [vmem:[#allocation2 + $0x408] sm:$0xf]  ;;  %v2642_v34 = vor.u32 %v3285_v26, %v2641_v25 }
  0x30   :  { %1451 = vmatpush.bf16.msra.mxu3 %v2510_v39  ;;  %v2942_v28 = vor.u32 %v3360_v21, %v2941_v20  ;;  %v3309_v29 = vld [vmem:[#allocation2 + $0x410] sm:$0xf0]  ;;  %v2833_v30 = vld [vmem:[#allocation2 + $0x4c8] sm:$0xf]  ;;  %v2629_v37 = vld [vmem:[#allocation2 + $0x330] sm:$0xf] }
  0x31   :  { %1457 = vmatpush.bf16.msrb.mxu0 %v2690_v40  ;;  %1426 = vmatmul.bf16.vlgmr.msra.gmra.mxu1 %v3595_v19  ;;  %v3333_v31 = vld [vmem:[#allocation2 + $0x4d0] sm:$0xf0]  ;;  %v2929_v32 = vld [vmem:[#allocation2 + $0x588] sm:$0xf]  ;;  %v2738_v35 = vor.u32 %v3309_v29, %v2737_v27  ;;  %v3282_v38 = vld [vmem:[#allocation2 + $0x338] sm:$0xf0] }
  0x32   :  { %1470 = vmatpush.bf16.msrb.mxu1 %v2786_v41  ;;  %1439 = vmatmul.bf16.vlgmr.msra.gmra.mxu2 %v3588_v7  ;;  %v3357_v33 = vld [vmem:[#allocation2 + $0x590] sm:$0xf0]  ;;  %v2834_v36 = vor.u32 %v3333_v31, %v2833_v30  ;;  %v2725_v39 = vld [vmem:[#allocation2 + $0x3f0] sm:$0xf]  ;;  %v3306_v41 = vld [vmem:[#allocation2 + $0x3f8] sm:$0xf0] }
  0x33   :  { %1483 = vmatpush.bf16.msrb.mxu2 %v2882_v42  ;;  %1413 = vmatmul.bf16.vlgmr.msra.gmra.mxu0 %v3592_v14  ;;  %v2930_v40 = vor.u32 %v3357_v33, %v2929_v32  ;;  %v2821_v42 = vld [vmem:[#allocation2 + $0x4b0] sm:$0xf]  ;;  %v3330_v43 = vld [vmem:[#allocation2 + $0x4b8] sm:$0xf0]  ;;  %v2726_v47 = vor.u32 %v3306_v41, %v2725_v39  ;;  %v2617_v49 = vld [vmem:[#allocation2 + $0x318] sm:$0xf] }
  0x34   :  { %1496 = vmatpush.bf16.msrb.mxu3 %v2978_v46  ;;  %v2917_v44 = vld [vmem:[#allocation2 + $0x570] sm:$0xf]  ;;  %v3354_v45 = vld [vmem:[#allocation2 + $0x578] sm:$0xf0]  ;;  %v2630_v46 = vor.u32 %v3282_v38, %v2629_v37  ;;  %v2822_v48 = vor.u32 %v3330_v43, %v2821_v42  ;;  %v3279_v50 = vld [vmem:[#allocation2 + $0x320] sm:$0xf0] }
  0x35   :  { %1458 = vmatpush.bf16.msrb.mxu0 %v2678_v52  ;;  %1452 = vmatmul.bf16.vlgmr.msra.gmra.mxu3 %v3590_v8  ;;  %v2713_v51 = vld [vmem:[#allocation2 + $0x3d8] sm:$0xf]  ;;  %v2918_v52 = vor.u32 %v3354_v45, %v2917_v44  ;;  %v3303_v53 = vld [vmem:[#allocation2 + $0x3e0] sm:$0xf0]  ;;  %v2605_v58 = vld [vmem:[#allocation2 + $0x300] sm:$0xf]  ;;  %v2618_v59 = vor.u32 %v3279_v50, %v2617_v49 }
  0x36   :  { %1471 = vmatpush.bf16.msrb.mxu1 %v2774_v55  ;;  %v2809_v54 = vld [vmem:[#allocation2 + $0x498] sm:$0xf]  ;;  %v3327_v55 = vld [vmem:[#allocation2 + $0x4a0] sm:$0xf0]  ;;  %v2701_v61 = vld [vmem:[#allocation2 + $0x3c0] sm:$0xf]  ;;  %v2714_v63 = vor.u32 %v3303_v53, %v2713_v51 }
  0x37   :  { %1484 = vmatpush.bf16.msrb.mxu2 %v2870_v56  ;;  %v2905_v56 = vld [vmem:[#allocation2 + $0x558] sm:$0xf]  ;;  %v3351_v57 = vld [vmem:[#allocation2 + $0x560] sm:$0xf0]  ;;  %v3300_v62 = vld [vmem:[#allocation2 + $0x3c8] sm:$0xf0]  ;;  %v2810_v0 = vor.u32 %v3327_v55, %v2809_v54 }
  0x38   :  { %1497 = vmatpush.bf16.msrb.mxu3 %v2966_v60  ;;  %v3276_v60 = vld [vmem:[#allocation2 + $0x308] sm:$0xf0]  ;;  %v2797_v1 = vld [vmem:[#allocation2 + $0x480] sm:$0xf]  ;;  %v88_v3 = vld [vmem:[%s3753_s0 + $0x18] sm:$0xff]  ;;  %v2906_v4 = vor.u32 %v3351_v57, %v2905_v56  ;;  %v2702_v20 = vor.u32 %v3300_v62, %v2701_v61 }
  0x39   :  { %1459 = vmatpush.bf16.msrb.mxu0 %v2666_v6  ;;  %v3324_v2 = vld [vmem:[#allocation2 + $0x488] sm:$0xf0]  ;;  %v2893_v5 = vld [vmem:[#allocation2 + $0x540] sm:$0xf]  ;;  %v2307_v11 = vld [vmem:[#allocation2 + $0xb4] sm:$0xf0]  ;;  %v2606_v13 = vor.u32 %v3276_v60, %v2605_v58  ;;  %v363_v18 = vunpack.c.l.b16 %v88_v3  ;;  %v364_v25 = vunpack.c.h.b16 %v88_v3 }
  0x3a   :  { %1472 = vmatpush.bf16.msrb.mxu1 %v2762_v9  ;;  %v3348_v6 = vld [vmem:[#allocation2 + $0x548] sm:$0xf0]  ;;  %v87_v9 = vld [vmem:[%s3753_s0 + $0x10] sm:$0xff]  ;;  %v2499_v17 = vld [vmem:[#allocation2 + $0x234] sm:$0xf0]  ;;  %v2798_v21 = vor.u32 %v3324_v2, %v2797_v1 }
  0x3b   :  { %1485 = vmatpush.bf16.msrb.mxu2 %v2858_v10  ;;  %v3200_v10 = vld [vmem:[#allocation2 + $0xac] sm:$0xf]  ;;  %v2894_v26 = vor.u32 %v3348_v6, %v2893_v5  ;;  %v3197_v31 = vld [vmem:[#allocation2 + $0x94] sm:$0xf]  ;;  %v2295_v32 = vld [vmem:[#allocation2 + $0x9c] sm:$0xf0]  ;;  %v3606_v38 = vpack.c.b16 %v363_v18, %v363_v18  ;;  %v3610_v42 = vpack.c.b16 %v364_v25, %v364_v25 }
  0x3c   :  { %1498 = vmatpush.bf16.msrb.mxu3 %v2954_v15  ;;  %v3224_v12 = vld [vmem:[#allocation2 + $0x16c] sm:$0xf]  ;;  %v2403_v15 = vld [vmem:[#allocation2 + $0x174] sm:$0xf0]  ;;  %v2310_v27 = vor.u32 %v3200_v10, %v2307_v11  ;;  %v3221_v33 = vld [vmem:[#allocation2 + $0x154] sm:$0xf]  ;;  %v2298_v43 = vor.u32 %v3197_v31, %v2295_v32 }
  0x3d   :  { %1460 = vmatpush.bf16.msrb.mxu0 %v2654_v22  ;;  %v3248_v16 = vld [vmem:[#allocation2 + $0x22c] sm:$0xf]  ;;  %v2406_v29 = vor.u32 %v3224_v12, %v2403_v15  ;;  %v2487_v37 = vld [vmem:[#allocation2 + $0x21c] sm:$0xf0]  ;;  %v3269_v39 = vld [vmem:[#allocation2 + $0x2d4] sm:$0xf] }
  0x3e   :  { %1473 = vmatpush.bf16.msrb.mxu1 %v2750_v23  ;;  %v3272_v22 = vld [vmem:[#allocation2 + $0x2ec] sm:$0xf]  ;;  %v2595_v23 = vld [vmem:[#allocation2 + $0x2f4] sm:$0xf0]  ;;  %v2502_v30 = vor.u32 %v3248_v16, %v2499_v17  ;;  %v3218_v49 = vld [vmem:[#allocation2 + $0x13c] sm:$0xf] }
  0x3f   :  { %1486 = vmatpush.bf16.msrb.mxu2 %v2846_v24  ;;  %v361_v24 = vunpack.c.l.b16 %v87_v9  ;;  %v2379_v51 = vld [vmem:[#allocation2 + $0x144] sm:$0xf0]  ;;  %v3266_v54 = vld [vmem:[#allocation2 + $0x2bc] sm:$0xf]  ;;  %v2271_v60 = vld [vmem:[#allocation2 + $0x6c] sm:$0xf0] }
  0x40   :  { %1499 = vmatpush.bf16.msrb.mxu3 %v2942_v28  ;;  %v362_v28 = vunpack.c.h.b16 %v87_v9  ;;  %v2475_v53 = vld [vmem:[#allocation2 + $0x204] sm:$0xf0]  ;;  %v2382_v57 = vor.u32 %v3218_v49, %v2379_v51  ;;  %v3215_v61 = vld [vmem:[#allocation2 + $0x124] sm:$0xf]  ;;  %v2463_v1 = vld [vmem:[#allocation2 + $0x1ec] sm:$0xf0] }
  0x41   :  { %1461 = vmatpush.bf16.msrb.mxu0 %v2642_v34  ;;  %v2598_v34 = vor.u32 %v3272_v22, %v2595_v23  ;;  %v3608_v41 = vpack.c.b16 %v361_v24, %v361_v24  ;;  %v2571_v55 = vld [vmem:[#allocation2 + $0x2c4] sm:$0xf0]  ;;  %v3263_v2 = vld [vmem:[#allocation2 + $0x2a4] sm:$0xf]  ;;  %v2559_v3 = vld [vmem:[#allocation2 + $0x2ac] sm:$0xf0] }
  0x42   :  { %1474 = vmatpush.bf16.msrb.mxu1 %v2738_v35  ;;  %v2391_v35 = vld [vmem:[#allocation2 + $0x15c] sm:$0xf0]  ;;  %v3612_v44 = vpack.c.b16 %v362_v28, %v362_v28  ;;  %v2574_v62 = vor.u32 %v3266_v54, %v2571_v55  ;;  %v3188_v9 = vld [vmem:[#allocation2 + $0x4c] sm:$0xf]  ;;  %v2259_v10 = vld [vmem:[#allocation2 + $0x54] sm:$0xf0]  ;;  %v2562_v12 = vor.u32 %v3263_v2, %v2559_v3 }
  0x43   :  { %1487 = vmatpush.bf16.msrb.mxu2 %v2834_v36  ;;  %v3245_v36 = vld [vmem:[#allocation2 + $0x214] sm:$0xf]  ;;  %v2394_v45 = vor.u32 %v3221_v33, %v2391_v35  ;;  %v3212_v11 = vld [vmem:[#allocation2 + $0x10c] sm:$0xf]  ;;  %v2451_v16 = vld [vmem:[#allocation2 + $0x1d4] sm:$0xf0] }
  0x44   :  { %1500 = vmatpush.bf16.msrb.mxu3 %v2930_v40  ;;  %v2583_v40 = vld [vmem:[#allocation2 + $0x2dc] sm:$0xf0]  ;;  %v3236_v15 = vld [vmem:[#allocation2 + $0x1cc] sm:$0xf]  ;;  %v2547_v18 = vld [vmem:[#allocation2 + $0x294] sm:$0xf0] }
  0x45   :  { %1462 = vmatpush.bf16.msrb.mxu0 %v2630_v46  ;;  %v2490_v46 = vor.u32 %v3245_v36, %v2487_v37  ;;  %v2586_v50 = vor.u32 %v3269_v39, %v2583_v40  ;;  %v3260_v17 = vld [vmem:[#allocation2 + $0x28c] sm:$0xf]  ;;  %v2454_v22 = vor.u32 %v3236_v15, %v2451_v16  ;;  %v3185_v23 = vld [vmem:[#allocation2 + $0x34] sm:$0xf]  ;;  %v2247_v24 = vld [vmem:[#allocation2 + $0x3c] sm:$0xf0] }
  0x46   :  { %1475 = vmatpush.bf16.msrb.mxu1 %v2726_v47  ;;  %v3194_v47 = vld [vmem:[#allocation2 + $0x7c] sm:$0xf]  ;;  %v3209_v25 = vld [vmem:[#allocation2 + $0xf4] sm:$0xf]  ;;  %v2535_v31 = vld [vmem:[#allocation2 + $0x27c] sm:$0xf0]  ;;  %v2250_v32 = vor.u32 %v3185_v23, %v2247_v24 }
  0x47   :  { %1488 = vmatpush.bf16.msrb.mxu2 %v2822_v48  ;;  %v2283_v48 = vld [vmem:[#allocation2 + $0x84] sm:$0xf0]  ;;  %v3233_v28 = vld [vmem:[#allocation2 + $0x1b4] sm:$0xf]  ;;  %v3182_v33 = vld [vmem:[#allocation2 + $0x1c] sm:$0xf] }
  0x48   :  { %1501 = vmatpush.bf16.msrb.mxu3 %v2918_v52  ;;  %v3242_v52 = vld [vmem:[#allocation2 + $0x1fc] sm:$0xf]  ;;  %v2286_v56 = vor.u32 %v3194_v47, %v2283_v48  ;;  %v2235_v36 = vld [vmem:[#allocation2 + $0x24] sm:$0xf0]  ;;  %v3179_v49 = vld [vmem:[#allocation2 + $0x4] sm:$0xf] }
  0x49   :  { %1463 = vmatpush.bf16.msrb.mxu0 %v2618_v59  ;;  %v2478_v58 = vor.u32 %v3242_v52, %v2475_v53  ;;  %v3191_v59 = vld [vmem:[#allocation2 + $0x64] sm:$0xf]  ;;  %v3206_v37 = vld [vmem:[#allocation2 + $0xdc] sm:$0xf]  ;;  %v2331_v39 = vld [vmem:[#allocation2 + $0xe4] sm:$0xf0]  ;;  %v2238_v48 = vor.u32 %v3182_v33, %v2235_v36 }
  0x4a   :  { %1476 = vmatpush.bf16.msrb.mxu1 %v2714_v63  ;;  %v2367_v63 = vld [vmem:[#allocation2 + $0x12c] sm:$0xf0]  ;;  %v2523_v47 = vld [vmem:[#allocation2 + $0x264] sm:$0xf0]  ;;  %v2334_v51 = vor.u32 %v3206_v37, %v2331_v39  ;;  %v3203_v53 = vld [vmem:[#allocation2 + $0xc4] sm:$0xf] }
  0x4b   :  { %1489 = vmatpush.bf16.msrb.mxu2 %v2810_v0  ;;  %v3239_v0 = vld [vmem:[#allocation2 + $0x1e4] sm:$0xf]  ;;  %v2370_v5 = vor.u32 %v3215_v61, %v2367_v63  ;;  %v2319_v54 = vld [vmem:[#allocation2 + $0xcc] sm:$0xf0]  ;;  %v2691_v61 = vld [vmem:[#allocation2 + $0x3b4] sm:$0xf0] }
  0x4c   :  { %1502 = vmatpush.bf16.msrb.mxu3 %v2906_v4  ;;  %v2274_v4 = vor.u32 %v3191_v59, %v2271_v60  ;;  %v2466_v6 = vor.u32 %v3239_v0, %v2463_v1  ;;  %v3227_v55 = vld [vmem:[#allocation2 + $0x184] sm:$0xf]  ;;  %v2511_v59 = vld [vmem:[#allocation2 + $0x24c] sm:$0xf0]  ;;  %v3296_v60 = vld [vmem:[#allocation2 + $0x3ac] sm:$0xf]  ;;  %v2322_v3 = vor.u32 %v3203_v53, %v2319_v54 }
  0x4d   :  { %1464 = vmatpush.bf16.msrb.mxu0 %v2606_v13  ;;  %v2355_v13 = vld [vmem:[#allocation2 + $0x114] sm:$0xf0]  ;;  %v3344_v1 = vld [vmem:[#allocation2 + $0x52c] sm:$0xf]  ;;  %v2679_v15 = vld [vmem:[#allocation2 + $0x39c] sm:$0xf0] }
  0x4e   :  { %1477 = vmatpush.bf16.msrb.mxu1 %v2702_v20  ;;  %v2262_v20 = vor.u32 %v3188_v9, %v2259_v10  ;;  %v2787_v0 = vld [vmem:[#allocation2 + $0x474] sm:$0xf0]  ;;  %v2694_v10 = vor.u32 %v3296_v60, %v2691_v61  ;;  %v3317_v16 = vld [vmem:[#allocation2 + $0x454] sm:$0xf]  ;;  %v2967_v23 = vld [vmem:[#allocation2 + $0x5dc] sm:$0xf0] }
  0x4f   :  { %1490 = vmatpush.bf16.msrb.mxu2 %v2798_v21  ;;  %v2358_v21 = vor.u32 %v3212_v11, %v2355_v13  ;;  %v2883_v2 = vld [vmem:[#allocation2 + $0x534] sm:$0xf0]  ;;  %v3293_v13 = vld [vmem:[#allocation2 + $0x394] sm:$0xf]  ;;  %v2859_v33 = vld [vmem:[#allocation2 + $0x504] sm:$0xf0] }
  0x50   :  { %1503 = vmatpush.bf16.msrb.mxu3 %v2894_v26  ;;  %1465 = vmatmul.bf16.vlgmr.msrb.gmra.mxu0 %v3608_v41  ;;  %v2550_v26 = vor.u32 %v3260_v17, %v2547_v18  ;;  %v2775_v18 = vld [vmem:[#allocation2 + $0x45c] sm:$0xf0]  ;;  %v2682_v24 = vor.u32 %v3293_v13, %v2679_v15  ;;  %v3332_v60 = vld [vmem:[#allocation2 + $0x4cc] sm:$0xf]  ;;  %v2835_v61 = vld [vmem:[#allocation2 + $0x4d4] sm:$0xf0] }
  0x51   :  { %1509 = vmatpush.bf16.msra.mxu0 %v2310_v27  ;;  %1478 = vmatmul.bf16.vlgmr.msrb.gmra.mxu1 %v3612_v44  ;;  %v2343_v27 = vld [vmem:[#allocation2 + $0xfc] sm:$0xf0] }
  0x52   :  { %1522 = vmatpush.bf16.msra.mxu1 %v2406_v29  ;;  %1491 = vmatmul.bf16.vlgmr.msrb.gmra.mxu2 %v3606_v38  ;;  %v2439_v29 = vld [vmem:[#allocation2 + $0x1bc] sm:$0xf0] }
  0x53   :  { %1535 = vmatpush.bf16.msra.mxu2 %v2502_v30  ;;  %1504 = vmatmul.bf16.vlgmr.msrb.gmra.mxu3 %v3610_v42  ;;  %v3257_v30 = vld [vmem:[#allocation2 + $0x274] sm:$0xf]  ;;  %v2442_v35 = vor.u32 %v3233_v28, %v2439_v29  ;;  %v2667_v28 = vld [vmem:[#allocation2 + $0x384] sm:$0xf0]  ;;  %v3314_v29 = vld [vmem:[#allocation2 + $0x43c] sm:$0xf] }
  0x54   :  { %1548 = vmatpush.bf16.msra.mxu3 %v2598_v34  ;;  %v2346_v34 = vor.u32 %v3209_v25, %v2343_v27  ;;  %v2538_v40 = vor.u32 %v3257_v30, %v2535_v31  ;;  %v2778_v25 = vor.u32 %v3317_v16, %v2775_v18  ;;  %v3290_v27 = vld [vmem:[#allocation2 + $0x37c] sm:$0xf]  ;;  %v2763_v31 = vld [vmem:[#allocation2 + $0x444] sm:$0xf0]  ;;  %v2919_v13 = vld [vmem:[#allocation2 + $0x57c] sm:$0xf0] }
  0x55   :  { %1510 = vmatpush.bf16.msra.mxu0 %v2298_v43  ;;  %v3230_v43 = vld [vmem:[#allocation2 + $0x19c] sm:$0xf]  ;;  %v2670_v36 = vor.u32 %v3290_v27, %v2667_v28  ;;  %v2766_v37 = vor.u32 %v3314_v29, %v2763_v31  ;;  %v2907_v27 = vld [vmem:[#allocation2 + $0x564] sm:$0xf0]  ;;  %v3275_v29 = vld [vmem:[#allocation2 + $0x304] sm:$0xf] }
  0x56   :  { %1523 = vmatpush.bf16.msra.mxu1 %v2394_v45  ;;  %v2427_v45 = vld [vmem:[#allocation2 + $0x1a4] sm:$0xf0]  ;;  %v3278_v18 = vld [vmem:[#allocation2 + $0x31c] sm:$0xf] }
  0x57   :  { %1536 = vmatpush.bf16.msra.mxu2 %v2490_v46  ;;  %v3254_v46 = vld [vmem:[#allocation2 + $0x25c] sm:$0xf]  ;;  %v2430_v52 = vor.u32 %v3230_v43, %v2427_v45  ;;  %v2655_v43 = vld [vmem:[#allocation2 + $0x36c] sm:$0xf0]  ;;  %v3311_v45 = vld [vmem:[#allocation2 + $0x424] sm:$0xf] }
  0x58   :  { %1549 = vmatpush.bf16.msra.mxu3 %v2586_v50  ;;  %v2223_v50 = vld [vmem:[#allocation2 + $0xc] sm:$0xf0] }
  0x59   :  { %1511 = vmatpush.bf16.msra.mxu0 %v2286_v56  ;;  %v2526_v56 = vor.u32 %v3254_v46, %v2523_v47  ;;  %v2226_v63 = vor.u32 %v3179_v49, %v2223_v50  ;;  %v2751_v47 = vld [vmem:[#allocation2 + $0x42c] sm:$0xf0]  ;;  %v3359_v50 = vld [vmem:[#allocation2 + $0x5a4] sm:$0xf] }
  0x5a   :  { %1524 = vmatpush.bf16.msra.mxu1 %v2382_v57  ;;  %v2415_v57 = vld [vmem:[#allocation2 + $0x18c] sm:$0xf0]  ;;  %v2754_v53 = vor.u32 %v3311_v45, %v2751_v47  ;;  %v3202_v45 = vld [vmem:[#allocation2 + $0xb8] sm:$0xf0] }
  0x5b   :  { %1537 = vmatpush.bf16.msra.mxu2 %v2478_v58  ;;  %v3251_v58 = vld [vmem:[#allocation2 + $0x244] sm:$0xf]  ;;  %v2847_v49 = vld [vmem:[#allocation2 + $0x4ec] sm:$0xf0] }
  0x5c   :  { %1550 = vmatpush.bf16.msra.mxu3 %v2574_v62  ;;  %v3320_v62 = vld [vmem:[#allocation2 + $0x46c] sm:$0xf]  ;;  %v2514_v9 = vor.u32 %v3251_v58, %v2511_v59  ;;  %v2739_v59 = vld [vmem:[#allocation2 + $0x414] sm:$0xf0] }
  0x5d   :  { %1512 = vmatpush.bf16.msra.mxu0 %v2274_v4  ;;  %v2418_v4 = vor.u32 %v3227_v55, %v2415_v57  ;;  %v2790_v11 = vor.u32 %v3320_v62, %v2787_v0  ;;  %v3284_v55 = vld [vmem:[#allocation2 + $0x34c] sm:$0xf] }
  0x5e   :  { %1525 = vmatpush.bf16.msra.mxu1 %v2370_v5  ;;  %v3368_v5 = vld [vmem:[#allocation2 + $0x5ec] sm:$0xf] }
  0x5f   :  { %1538 = vmatpush.bf16.msra.mxu2 %v2466_v6  ;;  %v2979_v6 = vld [vmem:[#allocation2 + $0x5f4] sm:$0xf0]  ;;  %v3308_v57 = vld [vmem:[#allocation2 + $0x40c] sm:$0xf] }
  0x60   :  { %1551 = vmatpush.bf16.msra.mxu3 %v2562_v12  ;;  %v2886_v12 = vor.u32 %v3344_v1, %v2883_v2  ;;  %v2982_v17 = vor.u32 %v3368_v5, %v2979_v6  ;;  %v3356_v62 = vld [vmem:[#allocation2 + $0x58c] sm:$0xf]  ;;  %v2742_v1 = vor.u32 %v3308_v57, %v2739_v59  ;;  %v2838_v2 = vor.u32 %v3332_v60, %v2835_v61  ;;  %v3305_v5 = vld [vmem:[#allocation2 + $0x3f4] sm:$0xf]  ;;  %v2301_v59 = vld [vmem:[#allocation2 + $0x98] sm:$0xf] }
  0x61   :  { %1513 = vmatpush.bf16.msra.mxu0 %v2262_v20  ;;  %v3341_v20 = vld [vmem:[#allocation2 + $0x514] sm:$0xf]  ;;  %v3199_v60 = vld [vmem:[#allocation2 + $0xa0] sm:$0xf0]  ;;  %v2397_v61 = vld [vmem:[#allocation2 + $0x158] sm:$0xf] }
  0x62   :  { %1526 = vmatpush.bf16.msra.mxu1 %v2358_v21  ;;  %v2871_v21 = vld [vmem:[#allocation2 + $0x51c] sm:$0xf0] }
  0x63   :  { %1539 = vmatpush.bf16.msra.mxu2 %v2454_v22  ;;  %v3365_v22 = vld [vmem:[#allocation2 + $0x5d4] sm:$0xf] }
  0x64   :  { %1552 = vmatpush.bf16.msra.mxu3 %v2550_v26  ;;  %v2874_v26 = vor.u32 %v3341_v20, %v2871_v21  ;;  %v2970_v30 = vor.u32 %v3365_v22, %v2967_v23  ;;  %v2619_v20 = vld [vmem:[#allocation2 + $0x324] sm:$0xf0]  ;;  %v3302_v21 = vld [vmem:[#allocation2 + $0x3dc] sm:$0xf] }
  0x65   :  { %1514 = vmatpush.bf16.msra.mxu0 %v2250_v32  ;;  %v3338_v32 = vld [vmem:[#allocation2 + $0x4fc] sm:$0xf]  ;;  %v2715_v23 = vld [vmem:[#allocation2 + $0x3e4] sm:$0xf0]  ;;  %v2622_v28 = vor.u32 %v3278_v18, %v2619_v20  ;;  %v3268_v18 = vld [vmem:[#allocation2 + $0x2c8] sm:$0xf0] }
  0x66   :  { %1527 = vmatpush.bf16.msra.mxu1 %v2346_v34  ;;  %v3362_v34 = vld [vmem:[#allocation2 + $0x5bc] sm:$0xf]  ;;  %v2862_v39 = vor.u32 %v3338_v32, %v2859_v33  ;;  %v2718_v31 = vor.u32 %v3302_v21, %v2715_v23  ;;  %v3299_v33 = vld [vmem:[#allocation2 + $0x3c4] sm:$0xf]  ;;  %v2277_v23 = vld [vmem:[#allocation2 + $0x68] sm:$0xf] }
  0x67   :  { %1540 = vmatpush.bf16.msra.mxu2 %v2442_v35  ;;  %v2955_v35 = vld [vmem:[#allocation2 + $0x5c4] sm:$0xf0] }
  0x68   :  { %1553 = vmatpush.bf16.msra.mxu3 %v2538_v40  ;;  %v3287_v40 = vld [vmem:[#allocation2 + $0x364] sm:$0xf]  ;;  %v2958_v46 = vor.u32 %v3362_v34, %v2955_v35  ;;  %v2703_v34 = vld [vmem:[#allocation2 + $0x3cc] sm:$0xf0] }
  0x69   :  { %1515 = vmatpush.bf16.msra.mxu0 %v2238_v48  ;;  %v3335_v48 = vld [vmem:[#allocation2 + $0x4e4] sm:$0xf] }
  0x6a   :  { %1528 = vmatpush.bf16.msra.mxu1 %v2334_v51  ;;  %v2943_v51 = vld [vmem:[#allocation2 + $0x5ac] sm:$0xf0]  ;;  %v2850_v54 = vor.u32 %v3335_v48, %v2847_v49  ;;  %v3323_v35 = vld [vmem:[#allocation2 + $0x484] sm:$0xf]  ;;  %v3226_v48 = vld [vmem:[#allocation2 + $0x178] sm:$0xf0] }
  0x6b   :  { %1541 = vmatpush.bf16.msra.mxu2 %v2430_v52  ;;  %v2658_v52 = vor.u32 %v3287_v40, %v2655_v43  ;;  %v2946_v58 = vor.u32 %v3359_v50, %v2943_v51  ;;  %v2895_v40 = vld [vmem:[#allocation2 + $0x54c] sm:$0xf0]  ;;  %v3250_v50 = vld [vmem:[#allocation2 + $0x238] sm:$0xf0]  ;;  %v2706_v51 = vor.u32 %v3299_v33, %v2703_v34 }
  0x6c   :  { %1554 = vmatpush.bf16.msra.mxu3 %v2526_v56  ;;  %v2643_v56 = vld [vmem:[#allocation2 + $0x354] sm:$0xf0]  ;;  %v2313_v43 = vld [vmem:[#allocation2 + $0xb0] sm:$0xf] }
  0x6d   :  { %1516 = vmatpush.bf16.msra.mxu0 %v2226_v63  ;;  %v2931_v63 = vld [vmem:[#allocation2 + $0x594] sm:$0xf0]  ;;  %v2646_v0 = vor.u32 %v3284_v55, %v2643_v56  ;;  %v2505_v49 = vld [vmem:[#allocation2 + $0x230] sm:$0xf]  ;;  %v2314_v56 = vor.u32 %v3202_v45, %v2313_v43  ;;  %v3238_v45 = vld [vmem:[#allocation2 + $0x1d8] sm:$0xf0] }
  0x6e   :  { %1529 = vmatpush.bf16.msra.mxu1 %v2322_v3  ;;  %v3281_v3 = vld [vmem:[#allocation2 + $0x334] sm:$0xf]  ;;  %v2934_v6 = vor.u32 %v3356_v62, %v2931_v63  ;;  %v3223_v63 = vld [vmem:[#allocation2 + $0x160] sm:$0xf0]  ;;  %v2457_v43 = vld [vmem:[#allocation2 + $0x1d0] sm:$0xf] }
  0x6f   :  { %1542 = vmatpush.bf16.msra.mxu2 %v2418_v4  ;;  %v2631_v4 = vld [vmem:[#allocation2 + $0x33c] sm:$0xf0] }
  0x70   :  { %1555 = vmatpush.bf16.msra.mxu3 %v2514_v9  ;;  %1517 = vmatmul.bf16.vlgmr.msra.gmra.mxu0 %v3592_v14  ;;  %v2727_v9 = vld [vmem:[#allocation2 + $0x3fc] sm:$0xf0]  ;;  %v2634_v15 = vor.u32 %v3281_v3, %v2631_v4  ;;  %v3271_v3 = vld [vmem:[#allocation2 + $0x2e0] sm:$0xf0]  ;;  %v2302_v4 = vor.u32 %v3199_v60, %v2301_v59 }
  0x71   :  { %1561 = vmatpush.bf16.msrb.mxu0 %v2694_v10  ;;  %1530 = vmatmul.bf16.vlgmr.msra.gmra.mxu1 %v3595_v19  ;;  %v3329_v10 = vld [vmem:[#allocation2 + $0x4b4] sm:$0xf]  ;;  %v2730_v16 = vor.u32 %v3305_v5, %v2727_v9  ;;  %v2398_v5 = vor.u32 %v3223_v63, %v2397_v61  ;;  %v2289_v9 = vld [vmem:[#allocation2 + $0x80] sm:$0xf]  ;;  %v3259_v59 = vld [vmem:[#allocation2 + $0x280] sm:$0xf0] }
  0x72   :  { %1574 = vmatpush.bf16.msrb.mxu1 %v2790_v11  ;;  %1543 = vmatmul.bf16.vlgmr.msra.gmra.mxu2 %v3588_v7  ;;  %v2823_v11 = vld [vmem:[#allocation2 + $0x4bc] sm:$0xf0] }
  0x73   :  { %1587 = vmatpush.bf16.msrb.mxu2 %v2886_v12  ;;  %1556 = vmatmul.bf16.vlgmr.msra.gmra.mxu3 %v3590_v8  ;;  %v3353_v12 = vld [vmem:[#allocation2 + $0x574] sm:$0xf]  ;;  %v2241_v63 = vld [vmem:[#allocation2 + $0x20] sm:$0xf] }
  0x74   :  { %1600 = vmatpush.bf16.msrb.mxu3 %v2982_v17  ;;  %v2826_v17 = vor.u32 %v3329_v10, %v2823_v11  ;;  %v2922_v22 = vor.u32 %v3353_v12, %v2919_v13  ;;  %v3196_v10 = vld [vmem:[#allocation2 + $0x88] sm:$0xf0]  ;;  %v2385_v11 = vld [vmem:[#allocation2 + $0x140] sm:$0xf] }
  0x75   :  { %1562 = vmatpush.bf16.msrb.mxu0 %v2682_v24  ;;  %v3326_v24 = vld [vmem:[#allocation2 + $0x49c] sm:$0xf]  ;;  %v3220_v13 = vld [vmem:[#allocation2 + $0x148] sm:$0xf0]  ;;  %v2290_v20 = vor.u32 %v3196_v10, %v2289_v9 }
  0x76   :  { %1575 = vmatpush.bf16.msrb.mxu1 %v2778_v25  ;;  %v2811_v25 = vld [vmem:[#allocation2 + $0x4a4] sm:$0xf0]  ;;  %v2386_v21 = vor.u32 %v3220_v13, %v2385_v11  ;;  %v3256_v9 = vld [vmem:[#allocation2 + $0x268] sm:$0xf0] }
  0x77   :  { %1588 = vmatpush.bf16.msrb.mxu2 %v2874_v26  ;;  %v3350_v26 = vld [vmem:[#allocation2 + $0x55c] sm:$0xf]  ;;  %v2814_v32 = vor.u32 %v3326_v24, %v2811_v25  ;;  %v3193_v24 = vld [vmem:[#allocation2 + $0x70] sm:$0xf0]  ;;  %v2373_v25 = vld [vmem:[#allocation2 + $0x128] sm:$0xf] }
  0x78   :  { %1601 = vmatpush.bf16.msrb.mxu3 %v2970_v30  ;;  %v2607_v30 = vld [vmem:[#allocation2 + $0x30c] sm:$0xf0]  ;;  %v2229_v11 = vld [vmem:[#allocation2 + $0x8] sm:$0xf] }
  0x79   :  { %1563 = vmatpush.bf16.msrb.mxu0 %v2670_v36  ;;  %v2910_v36 = vor.u32 %v3350_v26, %v2907_v27  ;;  %v2610_v47 = vor.u32 %v3275_v29, %v2607_v30  ;;  %v3217_v27 = vld [vmem:[#allocation2 + $0x130] sm:$0xf0]  ;;  %v2565_v30 = vld [vmem:[#allocation2 + $0x2a8] sm:$0xf] }
  0x7a   :  { %1576 = vmatpush.bf16.msrb.mxu1 %v2766_v37  ;;  %v2799_v37 = vld [vmem:[#allocation2 + $0x48c] sm:$0xf0]  ;;  %v3241_v29 = vld [vmem:[#allocation2 + $0x1f0] sm:$0xf0]  ;;  %v2374_v33 = vor.u32 %v3217_v27, %v2373_v25  ;;  %v3298_v25 = vld [vmem:[#allocation2 + $0x3b8] sm:$0xf0] }
  0x7b   :  { %1589 = vmatpush.bf16.msrb.mxu2 %v2862_v39  ;;  %v3347_v39 = vld [vmem:[#allocation2 + $0x544] sm:$0xf] }
  0x7c   :  { %1602 = vmatpush.bf16.msrb.mxu3 %v2958_v46  ;;  %v2409_v46 = vld [vmem:[#allocation2 + $0x170] sm:$0xf]  ;;  %v2898_v55 = vor.u32 %v3347_v39, %v2895_v40  ;;  %v3214_v40 = vld [vmem:[#allocation2 + $0x118] sm:$0xf0] }
  0x7d   :  { %1564 = vmatpush.bf16.msrb.mxu0 %v2658_v52  ;;  %v2802_v52 = vor.u32 %v3323_v35, %v2799_v37  ;;  %v2410_v57 = vor.u32 %v3226_v48, %v2409_v46  ;;  %v2265_v35 = vld [vmem:[#allocation2 + $0x50] sm:$0xf] }
  0x7e   :  { %1577 = vmatpush.bf16.msrb.mxu1 %v2754_v53  ;;  %v2601_v53 = vld [vmem:[#allocation2 + $0x2f0] sm:$0xf] }
  0x7f   :  { %1590 = vmatpush.bf16.msrb.mxu2 %v2850_v54  ;;  %v3274_v54 = vld [vmem:[#allocation2 + $0x2f8] sm:$0xf0]  ;;  %v2361_v37 = vld [vmem:[#allocation2 + $0x110] sm:$0xf] }
  0x80   :  { %1603 = vmatpush.bf16.msrb.mxu3 %v2946_v58  ;;  %v2506_v58 = vor.u32 %v3250_v50, %v2505_v49  ;;  %v2602_v62 = vor.u32 %v3274_v54, %v2601_v53  ;;  %v2553_v46 = vld [vmem:[#allocation2 + $0x290] sm:$0xf]  ;;  %v2362_v49 = vor.u32 %v3214_v40, %v2361_v37  ;;  %v2458_v50 = vor.u32 %v3238_v45, %v2457_v43  ;;  %v2349_v53 = vld [vmem:[#allocation2 + $0xf8] sm:$0xf]  ;;  %v3295_v43 = vld [vmem:[#allocation2 + $0x3a0] sm:$0xf0] }
  0x81   :  { %1565 = vmatpush.bf16.msrb.mxu0 %v2646_v0  ;;  %v2493_v0 = vld [vmem:[#allocation2 + $0x218] sm:$0xf] }
  0x82   :  { %1578 = vmatpush.bf16.msrb.mxu1 %v2742_v1  ;;  %v3247_v1 = vld [vmem:[#allocation2 + $0x220] sm:$0xf0]  ;;  %v2685_v40 = vld [vmem:[#allocation2 + $0x398] sm:$0xf] }
  0x83   :  { %1591 = vmatpush.bf16.msrb.mxu2 %v2838_v2  ;;  %v2589_v2 = vld [vmem:[#allocation2 + $0x2d8] sm:$0xf] }
  0x84   :  { %1604 = vmatpush.bf16.msrb.mxu3 %v2934_v6  ;;  %v2494_v6 = vor.u32 %v3247_v1, %v2493_v0  ;;  %v2590_v12 = vor.u32 %v3271_v3, %v2589_v2  ;;  %v3184_v0 = vld [vmem:[#allocation2 + $0x28] sm:$0xf0]  ;;  %v2337_v1 = vld [vmem:[#allocation2 + $0xe0] sm:$0xf]  ;;  %v2781_v45 = vld [vmem:[#allocation2 + $0x458] sm:$0xf] }
  0x85   :  { %1566 = vmatpush.bf16.msrb.mxu0 %v2634_v15  ;;  %v2481_v15 = vld [vmem:[#allocation2 + $0x200] sm:$0xf]  ;;  %v3208_v3 = vld [vmem:[#allocation2 + $0xe8] sm:$0xf0]  ;;  %v2242_v10 = vor.u32 %v3184_v0, %v2241_v63 }
  0x86   :  { %1579 = vmatpush.bf16.msrb.mxu1 %v2730_v16  ;;  %v3244_v16 = vld [vmem:[#allocation2 + $0x208] sm:$0xf0]  ;;  %v2338_v13 = vor.u32 %v3208_v3, %v2337_v1  ;;  %v2661_v3 = vld [vmem:[#allocation2 + $0x368] sm:$0xf] }
  0x87   :  { %1592 = vmatpush.bf16.msrb.mxu2 %v2826_v17  ;;  %v2577_v17 = vld [vmem:[#allocation2 + $0x2c0] sm:$0xf]  ;;  %v3364_v63 = vld [vmem:[#allocation2 + $0x5c8] sm:$0xf0] }
  0x88   :  { %1605 = vmatpush.bf16.msrb.mxu3 %v2922_v22  ;;  %v2482_v22 = vor.u32 %v3244_v16, %v2481_v15  ;;  %v2578_v26 = vor.u32 %v3268_v18, %v2577_v17  ;;  %v2325_v16 = vld [vmem:[#allocation2 + $0xc8] sm:$0xf]  ;;  %v3205_v17 = vld [vmem:[#allocation2 + $0xd0] sm:$0xf0] }
  0x89   :  { %1567 = vmatpush.bf16.msrb.mxu0 %v2622_v28  ;;  %v2469_v28 = vld [vmem:[#allocation2 + $0x1e8] sm:$0xf] }
  0x8a   :  { %1580 = vmatpush.bf16.msrb.mxu1 %v2718_v31  ;;  %v3265_v31 = vld [vmem:[#allocation2 + $0x2b0] sm:$0xf0]  ;;  %v2470_v34 = vor.u32 %v3241_v29, %v2469_v28  ;;  %v2421_v18 = vld [vmem:[#allocation2 + $0x188] sm:$0xf]  ;;  %v3322_v28 = vld [vmem:[#allocation2 + $0x478] sm:$0xf0] }
  0x8b   :  { %1593 = vmatpush.bf16.msrb.mxu2 %v2814_v32  ;;  %v2278_v32 = vor.u32 %v3193_v24, %v2277_v23  ;;  %v2566_v39 = vor.u32 %v3265_v31, %v2565_v30  ;;  %v3253_v23 = vld [vmem:[#allocation2 + $0x250] sm:$0xf0]  ;;  %v2697_v24 = vld [vmem:[#allocation2 + $0x3b0] sm:$0xf]  ;;  %v3346_v30 = vld [vmem:[#allocation2 + $0x538] sm:$0xf0]  ;;  %v2326_v31 = vor.u32 %v3205_v17, %v2325_v16 }
  0x8c   :  { %1606 = vmatpush.bf16.msrb.mxu3 %v2910_v36  ;;  %v3190_v36 = vld [vmem:[#allocation2 + $0x58] sm:$0xf0]  ;;  %v2889_v29 = vld [vmem:[#allocation2 + $0x530] sm:$0xf] }
  0x8d   :  { %1568 = vmatpush.bf16.msrb.mxu0 %v2610_v47  ;;  %v3262_v47 = vld [vmem:[#allocation2 + $0x298] sm:$0xf0]  ;;  %v2266_v48 = vor.u32 %v3190_v36, %v2265_v35  ;;  %v2698_v36 = vor.u32 %v3298_v25, %v2697_v24  ;;  %v2745_v16 = vld [vmem:[#allocation2 + $0x410] sm:$0xf] }
  0x8e   :  { %1581 = vmatpush.bf16.msrb.mxu1 %v2706_v51  ;;  %v2253_v51 = vld [vmem:[#allocation2 + $0x38] sm:$0xf]  ;;  %v2554_v54 = vor.u32 %v3262_v47, %v2553_v46  ;;  %v3319_v47 = vld [vmem:[#allocation2 + $0x460] sm:$0xf0] }
  0x8f   :  { %1594 = vmatpush.bf16.msrb.mxu2 %v2802_v52  ;;  %v3187_v52 = vld [vmem:[#allocation2 + $0x40] sm:$0xf0] }
  0x90   :  { %1607 = vmatpush.bf16.msrb.mxu3 %v2898_v55  ;;  %1569 = vmatmul.bf16.vlgmr.msrb.gmra.mxu0 %v3608_v41  ;;  %v3211_v55 = vld [vmem:[#allocation2 + $0x100] sm:$0xf0]  ;;  %v2254_v60 = vor.u32 %v3187_v52, %v2253_v51  ;;  %v2686_v52 = vor.u32 %v3295_v43, %v2685_v40  ;;  %v3633_v40 = vld [vmem:[%s3755_s2] sm:$0x7] }
  0x91   :  { %1613 = vmatpush.bf16.msra.mxu0 %v2314_v56  ;;  %1582 = vmatmul.bf16.vlgmr.msrb.gmra.mxu1 %v3612_v44  ;;  %v2445_v56 = vld [vmem:[#allocation2 + $0x1b8] sm:$0xf]  ;;  %v2350_v61 = vor.u32 %v3211_v55, %v2349_v53  ;;  %v3367_v51 = vld [vmem:[#allocation2 + $0x5e0] sm:$0xf0]  ;;  %v2782_v53 = vor.u32 %v3319_v47, %v2781_v45  ;;  %v2673_v55 = vld [vmem:[#allocation2 + $0x380] sm:$0xf] }
  0x92   :  { %1626 = vmatpush.bf16.msra.mxu1 %v2410_v57  ;;  %1595 = vmatmul.bf16.vlgmr.msrb.gmra.mxu2 %v3606_v38  ;;  %v3235_v57 = vld [vmem:[#allocation2 + $0x1c0] sm:$0xf0]  ;;  %v3280_v47 = vld [vmem:[#allocation2 + $0x328] sm:$0xf0] }
  0x93   :  { %1639 = vmatpush.bf16.msra.mxu2 %v2506_v58  ;;  %1608 = vmatmul.bf16.vlgmr.msrb.gmra.mxu3 %v3610_v42  ;;  %v2541_v58 = vld [vmem:[#allocation2 + $0x278] sm:$0xf] }
  0x94   :  { %1652 = vmatpush.bf16.msra.mxu3 %v2602_v62  ;;  %v2446_v62 = vor.u32 %v3235_v57, %v2445_v56  ;;  %v2542_v2 = vor.u32 %v3259_v59, %v2541_v58  ;;  %v3292_v56 = vld [vmem:[#allocation2 + $0x388] sm:$0xf0]  ;;  %v2769_v57 = vld [vmem:[#allocation2 + $0x440] sm:$0xf] }
  0x95   :  { %1614 = vmatpush.bf16.msra.mxu0 %v2302_v4  ;;  %v2433_v4 = vld [vmem:[#allocation2 + $0x1a0] sm:$0xf]  ;;  %v3316_v59 = vld [vmem:[#allocation2 + $0x448] sm:$0xf0]  ;;  %v2674_v0 = vor.u32 %v3292_v56, %v2673_v55 }
  0x96   :  { %1627 = vmatpush.bf16.msra.mxu1 %v2398_v5  ;;  %v3232_v5 = vld [vmem:[#allocation2 + $0x1a8] sm:$0xf0]  ;;  %v2770_v1 = vor.u32 %v3316_v59, %v2769_v57  ;;  %v2913_v55 = vld [vmem:[#allocation2 + $0x560] sm:$0xf]  ;;  %v347_v57 = vperm.slane %v3633_v40, 0 }
  0x97   :  { %1640 = vmatpush.bf16.msra.mxu2 %v2494_v6  ;;  %v2529_v6 = vld [vmem:[#allocation2 + $0x260] sm:$0xf]  ;;  %v2434_v15 = vor.u32 %v3232_v5, %v2433_v4  ;;  %v3289_v4 = vld [vmem:[#allocation2 + $0x370] sm:$0xf0]  ;;  %v3352_v56 = vld [vmem:[#allocation2 + $0x568] sm:$0xf0] }
  0x98   :  { %1653 = vmatpush.bf16.msra.mxu3 %v2590_v12  ;;  %v3181_v12 = vld [vmem:[#allocation2 + $0x10] sm:$0xf0] }
  0x99   :  { %1615 = vmatpush.bf16.msra.mxu0 %v2290_v20  ;;  %v2530_v20 = vor.u32 %v3256_v9, %v2529_v6  ;;  %v2230_v27 = vor.u32 %v3181_v12, %v2229_v11  ;;  %v3313_v6 = vld [vmem:[#allocation2 + $0x430] sm:$0xf0]  ;;  %v2853_v9 = vld [vmem:[#allocation2 + $0x4e8] sm:$0xf] }
  0x9a   :  { %1628 = vmatpush.bf16.msra.mxu1 %v2386_v21  ;;  %v3229_v21 = vld [vmem:[#allocation2 + $0x190] sm:$0xf0]  ;;  %v2949_v11 = vld [vmem:[#allocation2 + $0x5a8] sm:$0xf] }
  0x9b   :  { %1641 = vmatpush.bf16.msra.mxu2 %v2482_v22  ;;  %v2517_v22 = vld [vmem:[#allocation2 + $0x248] sm:$0xf] }
  0x9c   :  { %1654 = vmatpush.bf16.msra.mxu3 %v2578_v26  ;;  %v2793_v26 = vld [vmem:[#allocation2 + $0x470] sm:$0xf]  ;;  %v2518_v35 = vor.u32 %v3253_v23, %v2517_v22  ;;  %v3358_v23 = vld [vmem:[#allocation2 + $0x598] sm:$0xf0] }
  0x9d   :  { %1616 = vmatpush.bf16.msra.mxu0 %v2278_v32  ;;  %v2422_v32 = vor.u32 %v3229_v21, %v2421_v18  ;;  %v2794_v37 = vor.u32 %v3322_v28, %v2793_v26  ;;  %v3310_v18 = vld [vmem:[#allocation2 + $0x418] sm:$0xf0]  ;;  %v2937_v22 = vld [vmem:[#allocation2 + $0x590] sm:$0xf]  ;;  %v2637_v28 = vld [vmem:[#allocation2 + $0x338] sm:$0xf] }
  0x9e   :  { %1629 = vmatpush.bf16.msra.mxu1 %v2374_v33  ;;  %v2985_v33 = vld [vmem:[#allocation2 + $0x5f0] sm:$0xf]  ;;  %v3334_v21 = vld [vmem:[#allocation2 + $0x4d8] sm:$0xf0]  ;;  %v2746_v26 = vor.u32 %v3310_v18, %v2745_v16  ;;  %v3376_v18 = vld [vmem:[%s3756_s3 + $0x28] sm:$0xff] }
  0x9f   :  { %1642 = vmatpush.bf16.msra.mxu2 %v2470_v34  ;;  %v3370_v34 = vld [vmem:[#allocation2 + $0x5f8] sm:$0xf0]  ;;  %v3377_v16 = vld [vmem:[%s3756_s3 + $0x30] sm:$0xff] }
  0xa0   :  { %1655 = vmatpush.bf16.msra.mxu3 %v2566_v39  ;;  %v2890_v39 = vor.u32 %v3346_v30, %v2889_v29  ;;  %v2986_v46 = vor.u32 %v3370_v34, %v2985_v33  ;;  %v3283_v29 = vld [vmem:[#allocation2 + $0x340] sm:$0xf0]  ;;  %v2733_v30 = vld [vmem:[#allocation2 + $0x3f8] sm:$0xf] }
  0xa1   :  { %1617 = vmatpush.bf16.msra.mxu0 %v2266_v48  ;;  %v2877_v48 = vld [vmem:[#allocation2 + $0x518] sm:$0xf]  ;;  %v3307_v33 = vld [vmem:[#allocation2 + $0x400] sm:$0xf0] }
  0xa2   :  { %1630 = vmatpush.bf16.msra.mxu1 %v2362_v49  ;;  %v3343_v49 = vld [vmem:[#allocation2 + $0x520] sm:$0xf0]  ;;  %v2829_v34 = vld [vmem:[#allocation2 + $0x4b8] sm:$0xf]  ;;  %v2734_v43 = vor.u32 %v3307_v33, %v2733_v30 }
  0xa3   :  { %1643 = vmatpush.bf16.msra.mxu2 %v2458_v50  ;;  %v2973_v50 = vld [vmem:[#allocation2 + $0x5d8] sm:$0xf] }
  0xa4   :  { %1656 = vmatpush.bf16.msra.mxu3 %v2554_v54  ;;  %v2878_v54 = vor.u32 %v3343_v49, %v2877_v48  ;;  %v2974_v58 = vor.u32 %v3367_v51, %v2973_v50  ;;  %v2721_v48 = vld [vmem:[#allocation2 + $0x3e0] sm:$0xf]  ;;  %v3304_v51 = vld [vmem:[#allocation2 + $0x3e8] sm:$0xf0] }
  0xa5   :  { %1618 = vmatpush.bf16.msra.mxu0 %v2254_v60  ;;  %v2865_v60 = vld [vmem:[#allocation2 + $0x500] sm:$0xf] }
  0xa6   :  { %1631 = vmatpush.bf16.msra.mxu1 %v2350_v61  ;;  %v3340_v61 = vld [vmem:[#allocation2 + $0x508] sm:$0xf0] }
  0xa7   :  { %1644 = vmatpush.bf16.msra.mxu2 %v2446_v62  ;;  %v2961_v62 = vld [vmem:[#allocation2 + $0x5c0] sm:$0xf] }
  0xa8   :  { %1657 = vmatpush.bf16.msra.mxu3 %v2542_v2  ;;  %v2866_v2 = vor.u32 %v3340_v61, %v2865_v60  ;;  %v2962_v5 = vor.u32 %v3364_v63, %v2961_v62  ;;  %v2722_v60 = vor.u32 %v3304_v51, %v2721_v48  ;;  %v2613_v62 = vld [vmem:[#allocation2 + $0x308] sm:$0xf]  ;;  %v3277_v63 = vld [vmem:[#allocation2 + $0x310] sm:$0xf0] }
  0xa9   :  { %1619 = vmatpush.bf16.msra.mxu0 %v2242_v10  ;;  %v3337_v10 = vld [vmem:[#allocation2 + $0x4f0] sm:$0xf0] }
  0xaa   :  { %1632 = vmatpush.bf16.msra.mxu1 %v2338_v13  ;;  %v2649_v13 = vld [vmem:[#allocation2 + $0x350] sm:$0xf] }
  0xab   :  { %1645 = vmatpush.bf16.msra.mxu2 %v2434_v15  ;;  %v3286_v15 = vld [vmem:[#allocation2 + $0x358] sm:$0xf0] }
  0xac   :  { %1658 = vmatpush.bf16.msra.mxu3 %v2530_v20  ;;  %v2841_v20 = vld [vmem:[#allocation2 + $0x4d0] sm:$0xf]  ;;  %v2650_v24 = vor.u32 %v3286_v15, %v2649_v13 }
  0xad   :  { %1620 = vmatpush.bf16.msra.mxu0 %v2230_v27  ;;  %v2842_v27 = vor.u32 %v3334_v21, %v2841_v20  ;;  %v3386_v21 = vld [vmem:[%s3756_s3 + $0x78] sm:$0xff] }
  0xae   :  { %1633 = vmatpush.bf16.msra.mxu1 %v2326_v31  ;;  %v1427_v31 = vpop.f32.mrf.mxu1 }
  0xaf   :  { %1646 = vmatpush.bf16.msra.mxu2 %v2422_v32  ;;  %v2938_v32 = vor.u32 %v3358_v23, %v2937_v22  ;;  %v3374_v23 = vld [vmem:[%s3756_s3 + $0x18] sm:$0xff] }
  0xb0   :  { %1659 = vmatpush.bf16.msra.mxu3 %v2518_v35  ;;  %1621 = vmatmul.bf16.vlgmr.msra.gmra.mxu0 %v3592_v14  ;;  %v3361_v14 = vld [vmem:[#allocation2 + $0x5b0] sm:$0xf0]  ;;  %v1414_v25 = vpop.f32.mrf.mxu0  ;;  %v3331_v35 = vld [vmem:[#allocation2 + $0x4c0] sm:$0xf0] }
  0xb1   :  { %1665 = vmatpush.bf16.msrb.mxu0 %v2698_v36  ;;  %1634 = vmatmul.bf16.vlgmr.msra.gmra.mxu1 %v3595_v19  ;;  %v2854_v19 = vor.u32 %v3337_v10, %v2853_v9  ;;  %v2950_v17 = vor.u32 %v3361_v14, %v2949_v11  ;;  %v2925_v36 = vld [vmem:[#allocation2 + $0x578] sm:$0xf]  ;;  %v2830_v45 = vor.u32 %v3331_v35, %v2829_v34  ;;  %v3383_v34 = vld [vmem:[%s3756_s3 + $0x60] sm:$0xff]  ;;  %v3372_v35 = vld [vmem:[%s3756_s3 + $0x8] sm:$0xff] }
  0xb2   :  { %1678 = vmatpush.bf16.msrb.mxu1 %v2794_v37  ;;  %1647 = vmatmul.bf16.vlgmr.msra.gmra.mxu2 %v3588_v7  ;;  %v2757_v7 = vld [vmem:[#allocation2 + $0x428] sm:$0xf]  ;;  %v3355_v37 = vld [vmem:[#allocation2 + $0x580] sm:$0xf0]  ;;  %v1415_v9 = vadd.f32 %v1414_v25, %v347_v57  ;;  %v2614_v10 = vor.u32 %v3277_v63, %v2613_v62 }
  0xb3   :  { %1691 = vmatpush.bf16.msrb.mxu2 %v2890_v39  ;;  %1660 = vmatmul.bf16.vlgmr.msra.gmra.mxu3 %v3590_v8  ;;  %v2662_v8 = vor.u32 %v3289_v4, %v2661_v3  ;;  %v2758_v12 = vor.u32 %v3313_v6, %v2757_v7  ;;  %v2638_v39 = vor.u32 %v3283_v29, %v2637_v28  ;;  %v3301_v3 = vld [vmem:[#allocation2 + $0x3d0] sm:$0xf0]  ;;  %v2805_v4 = vld [vmem:[#allocation2 + $0x488] sm:$0xf] }
  0xb4   :  { %1704 = vmatpush.bf16.msrb.mxu3 %v2986_v46  ;;  %v2625_v46 = vld [vmem:[#allocation2 + $0x320] sm:$0xf]  ;;  %v2926_v50 = vor.u32 %v3355_v37, %v2925_v36  ;;  %v3325_v7 = vld [vmem:[#allocation2 + $0x490] sm:$0xf0]  ;;  %v1428_v15 = vadd.f32 %v1427_v31, %v1415_v9  ;;  %v3384_v28 = vld [vmem:[%s3756_s3 + $0x68] sm:$0xff] }
  0xb5   :  { %1666 = vmatpush.bf16.msrb.mxu0 %v2686_v52  ;;  %v1440_v49 = vpop.f32.mrf.mxu2  ;;  %v2817_v52 = vld [vmem:[#allocation2 + $0x4a0] sm:$0xf]  ;;  %v3349_v6 = vld [vmem:[#allocation2 + $0x550] sm:$0xf0]  ;;  %v2806_v14 = vor.u32 %v3325_v7, %v2805_v4 }
  0xb6   :  { %1679 = vmatpush.bf16.msrb.mxu1 %v2782_v53  ;;  %v3328_v53 = vld [vmem:[#allocation2 + $0x4a8] sm:$0xf0]  ;;  %v3373_v29 = vld [vmem:[%s3756_s3 + $0x10] sm:$0xff] }
  0xb7   :  { %1692 = vmatpush.bf16.msrb.mxu2 %v2878_v54  ;;  %v2818_v61 = vor.u32 %v3328_v53, %v2817_v52  ;;  %v3380_v53 = vld [vmem:[%s3756_s3 + $0x48] sm:$0xff] }
  0xb8   :  { %1705 = vmatpush.bf16.msrb.mxu3 %v2974_v58  ;;  %v1453_v54 = vpop.f32.mrf.mxu3  ;;  %v2626_v58 = vor.u32 %v3280_v47, %v2625_v46  ;;  %v1416_v59 = vpop.f32.mrf.mxu0  ;;  %v3382_v46 = vld [vmem:[%s3756_s3 + $0x58] sm:$0xff] }
  0xb9   :  { %1667 = vmatpush.bf16.msrb.mxu0 %v2674_v0  ;;  %v2709_v0 = vld [vmem:[#allocation2 + $0x3c8] sm:$0xf] }
  0xba   :  { %1680 = vmatpush.bf16.msrb.mxu1 %v2770_v1  ;;  %v1429_v1 = vpop.f32.mrf.mxu1  ;;  %v2710_v11 = vor.u32 %v3301_v3, %v2709_v0 }
  0xbb   :  { %1693 = vmatpush.bf16.msrb.mxu2 %v2866_v2  ;;  %v2914_v2 = vor.u32 %v3352_v56, %v2913_v55  ;;  %v348_v55 = vperm.slane %v3633_v40, 1  ;;  %v3379_v56 = vld [vmem:[%s3756_s3 + $0x40] sm:$0xff] }
  0xbc   :  { %1706 = vmatpush.bf16.msrb.mxu3 %v2962_v5  ;;  %v2901_v5 = vld [vmem:[#allocation2 + $0x548] sm:$0xf] }
  0xbd   :  { %1668 = vmatpush.bf16.msrb.mxu0 %v2662_v8  ;;  %v1442_v8 = vpop.f32.mrf.mxu2 }
  0xbe   :  { %1681 = vmatpush.bf16.msrb.mxu1 %v2758_v12  ;;  %v2902_v12 = vor.u32 %v3349_v6, %v2901_v5  ;;  %v3394_v5 = vld [vmem:[%s3756_s3 + $0xb8] sm:$0xff] }
  0xbf   :  { %1694 = vmatpush.bf16.msrb.mxu2 %v2854_v19  ;;  %v3378_v19 = vld [vmem:[%s3756_s3 + $0x38] sm:$0xff] }
  0xc0   :  { %1707 = vmatpush.bf16.msrb.mxu3 %v2950_v17  ;;  %v1455_v13 = vpop.f32.mrf.mxu3  ;;  %v1441_v17 = vadd.f32 %v1440_v49, %v1428_v15  ;;  %v3381_v49 = vld [vmem:[%s3756_s3 + $0x50] sm:$0xff] }
  0xc1   :  { %1669 = vmatpush.bf16.msrb.mxu0 %v2650_v24  ;;  %v3385_v24 = vld [vmem:[%s3756_s3 + $0x70] sm:$0xff] }
  0xc2   :  { %1682 = vmatpush.bf16.msrb.mxu1 %v2746_v26  ;;  %v1454_v20 = vadd.f32 %v1453_v54, %v1441_v17  ;;  %v3390_v17 = vld [vmem:[%s3756_s3 + $0x98] sm:$0xff] }
  0xc3   :  { %1695 = vmatpush.bf16.msrb.mxu2 %v2842_v27 }
  0xc4   :  { %1708 = vmatpush.bf16.msrb.mxu3 %v2938_v32 }
  0xc5   :  { %1670 = vmatpush.bf16.msrb.mxu0 %v2638_v39 }
  0xc6   :  { %1683 = vmatpush.bf16.msrb.mxu1 %v2734_v43  ;;  %v3371_v43 = vld [vmem:[%s3756_s3] sm:$0xff] }
  0xc7   :  { %1696 = vmatpush.bf16.msrb.mxu2 %v2830_v45 }
  0xc8   :  { %1709 = vmatpush.bf16.msrb.mxu3 %v2926_v50 }
  0xc9   :  { %1671 = vmatpush.bf16.msrb.mxu0 %v2626_v58 }
  0xca   :  { %1684 = vmatpush.bf16.msrb.mxu1 %v2722_v60 }
  0xcb   :  { %1697 = vmatpush.bf16.msrb.mxu2 %v2818_v61 }
  0xcc   :  { %1710 = vmatpush.bf16.msrb.mxu3 %v2914_v2 }
  0xcd   :  { %1672 = vmatpush.bf16.msrb.mxu0 %v2614_v10 }
  0xce   :  { %1685 = vmatpush.bf16.msrb.mxu1 %v2710_v11 }
  0xcf   :  { %1698 = vmatpush.bf16.msrb.mxu2 %v2806_v14  ;;  %v3393_v14 = vld [vmem:[%s3756_s3 + $0xb0] sm:$0xff] }
  0xd0   :  { %1711 = vmatpush.bf16.msrb.mxu3 %v2902_v12  ;;  %1673 = vmatmul.bf16.vlgmr.msrb.gmra.mxu0 %v3608_v41  ;;  %v3375_v41 = vld [vmem:[%s3756_s3 + $0x20] sm:$0xff] }
  0xd1   :  { %1922 = vmatpush.bf16.msra.mxu0 %v3378_v19  ;;  %1686 = vmatmul.bf16.vlgmr.msrb.gmra.mxu1 %v3612_v44  ;;  %v1466_v44 = vpop.f32.mrf.mxu0  ;;  %v3392_v19 = vld [vmem:[%s3756_s3 + $0xa8] sm:$0xff] }
  0xd2   :  { %1699 = vmatmul.bf16.vlgmr.msrb.gmra.mxu2 %v3606_v38  ;;  %v1467_v22 = vadd.f32 %v1466_v44, %v1454_v20  ;;  %v1479_v38 = vpop.f32.mrf.mxu1  ;;  %1935 = vmatpush.bf16.msra.mxu1 %v3386_v21  ;;  %v3389_v21 = vld [vmem:[%s3756_s3 + $0x90] sm:$0xff] }
  0xd3   :  { %1712 = vmatmul.bf16.vlgmr.msrb.gmra.mxu3 %v3610_v42  ;;  %1948 = vmatpush.bf16.msra.mxu2 %v3394_v5  ;;  %v3405_v5 = vld [vmem:[#allocation4 + $0x10] sm:$0xff] }
  0xd4   :  { %v1480_v42 = vadd.f32 %v1479_v38, %v1467_v22  ;;  %v3388_v22 = vld [vmem:[%s3756_s3 + $0x88] sm:$0xff] }
  0xd5   :  { %1923 = vmatpush.bf16.msra.mxu0 %v3377_v16  ;;  %v1492_v25 = vpop.f32.mrf.mxu2  ;;  %v3391_v16 = vld [vmem:[%s3756_s3 + $0xa0] sm:$0xff] }
  0xd6   :  { %v1493_v26 = vadd.f32 %v1492_v25, %v1480_v42  ;;  %v1505_v27 = vpop.f32.mrf.mxu3  ;;  %1936 = vmatpush.bf16.msra.mxu1 %v3385_v24  ;;  %v349_v24 = vperm.slane %v3633_v40, 2 }
  0xd7   :  { %1949 = vmatpush.bf16.msra.mxu2 %v3393_v14 }
  0xd8   :  { %v1506_v30 = vadd.f32 %v1505_v27, %v1493_v26 }
  0xd9   :  { %1924 = vmatpush.bf16.msra.mxu0 %v3376_v18  ;;  %v1468_v31 = vpop.f32.mrf.mxu0 }
  0xda   :  { %v1481_v32 = vpop.f32.mrf.mxu1  ;;  %1937 = vmatpush.bf16.msra.mxu1 %v3384_v28  ;;  %v1717_v33 = vmul.f32 0.01, %v1506_v30 }
  0xdb   :  { %1950 = vmatpush.bf16.msra.mxu2 %v3392_v19  ;;  %v3403_v19 = vld [vmem:[#allocation4] sm:$0xff] }
  0xdc   :  { %v1720_v39 = vmax.f32 %v1506_v30, %v1717_v33 }
  0xdd   :  { %1925 = vmatpush.bf16.msra.mxu0 %v3375_v41  ;;  %v1494_v36 = vpop.f32.mrf.mxu2 }
  0xde   :  { %v1507_v37 = vpop.f32.mrf.mxu3  ;;  %1938 = vmatpush.bf16.msra.mxu1 %v3383_v34  ;;  %v1723_v45 = vpack.c.bf16 %v1720_v39, %v1720_v39 }
  0xdf   :  { %1951 = vmatpush.bf16.msra.mxu2 %v3391_v16  ;;  %v3416_v16 = vld [vmem:[#allocation6 + $0x28] sm:$0xff] }
  0xe1   :  { %1926 = vmatpush.bf16.msra.mxu0 %v3374_v23  ;;  %v3387_v23 = vld [vmem:[%s3756_s3 + $0x80] sm:$0xff] }
  0xe2   :  { %1939 = vmatpush.bf16.msra.mxu1 %v3382_v46 }
  0xe3   :  { %1952 = vmatpush.bf16.msra.mxu2 %v3390_v17  ;;  %v3415_v17 = vld [vmem:[#allocation6 + $0x20] sm:$0xff] }
  0xe5   :  { %1927 = vmatpush.bf16.msra.mxu0 %v3373_v29 }
  0xe6   :  { %1940 = vmatpush.bf16.msra.mxu1 %v3381_v49 }
  0xe7   :  { %1953 = vmatpush.bf16.msra.mxu2 %v3389_v21  ;;  %v3427_v21 = vld [vmem:[%s3759_s6] ss:$0 sm:$0xff] }
  0xe9   :  { %1928 = vmatpush.bf16.msra.mxu0 %v3372_v35 }
  0xea   :  { %1941 = vmatpush.bf16.msra.mxu1 %v3380_v53  ;;  %v3401_v53 = vld [vmem:[%s3758_s5 + $0x30] sm:$0xff] }
  0xeb   :  { %1954 = vmatpush.bf16.msra.mxu2 %v3388_v22 }
  0xed   :  { %1929 = vmatpush.bf16.msra.mxu0 %v3371_v43  ;;  %v1518_v47 = vpop.f32.mrf.mxu0 }
  0xee   :  { %v1531_v48 = vpop.f32.mrf.mxu1  ;;  %1942 = vmatpush.bf16.msra.mxu1 %v3379_v56  ;;  %v1519_v59 = vadd.f32 %v1518_v47, %v348_v55  ;;  %v3399_v55 = vld [vmem:[%s3758_s5 + $0x20] sm:$0xff]  ;;  %v3398_v56 = vld [vmem:[%s3758_s5 + $0x18] sm:$0xff] }
  0xef   :  { %1955 = vmatpush.bf16.msra.mxu2 %v3387_v23 }
  0xf0   :  { %1930 = vmatmul.bf16.vlgmr.msra.gmra.mxu0 %v1723_v45  ;;  %v1532_v60 = vadd.f32 %v1531_v48, %v1519_v59 }
  0xf5   :  { %v1544_v50 = vpop.f32.mrf.mxu2  ;;  %v1520_v52 = vpop.f32.mrf.mxu0 }
  0xf6   :  { %v1557_v51 = vpop.f32.mrf.mxu3  ;;  %v1533_v54 = vpop.f32.mrf.mxu1  ;;  %v1545_v61 = vadd.f32 %v1544_v50, %v1532_v60  ;;  %v3402_v52 = vld [vmem:[%s3758_s5 + $0x38] sm:$0xff] }
  0xf7   :  { %2032 = vmatpush.bf16.msra.mxu3 %v3402_v52  ;;  %v3400_v54 = vld [vmem:[%s3758_s5 + $0x28] sm:$0xff] }
  0xf8   :  { %v1558_v62 = vadd.f32 %v1557_v51, %v1545_v61 }
  0xfb   :  { %2033 = vmatpush.bf16.msra.mxu3 %v3401_v53 }
  0xfd   :  { %v1546_v57 = vpop.f32.mrf.mxu2 }
  0xfe   :  { %v1559_v58 = vpop.f32.mrf.mxu3  ;;  %v3397_v57 = vld [vmem:[%s3758_s5 + $0x10] sm:$0xff] }
  0xff   :  { %2034 = vmatpush.bf16.msra.mxu3 %v3400_v54  ;;  %v3426_v58 = vld [vmem:[%s3757_s4] ss:$0 sm:$0xff] }
 0x103   :  { %2035 = vmatpush.bf16.msra.mxu3 %v3399_v55 }
 0x107   :  { %2036 = vmatpush.bf16.msra.mxu3 %v3398_v56 }
 0x10b   :  { %2037 = vmatpush.bf16.msra.mxu3 %v3397_v57 }
 0x10d   :  { %v1570_v63 = vpop.f32.mrf.mxu0 }
 0x10e   :  { %v1571_v0 = vadd.f32 %v1570_v63, %v1558_v62  ;;  %v1583_v1 = vpop.f32.mrf.mxu1  ;;  %v3396_v63 = vld [vmem:[%s3758_s5 + $0x8] sm:$0xff] }
 0x10f   :  { %2038 = vmatpush.bf16.msra.mxu3 %v3396_v63 }
 0x110   :  { %v1584_v2 = vadd.f32 %v1583_v1, %v1571_v0  ;;  %v3395_v0 = vld [vmem:[%s3758_s5] sm:$0xff]  ;;  %v3410_v1 = vld [vmem:[#allocation4 + $0x38] sm:$0xff] }
 0x111   :  { %2116 = vmatpush.bf16.msrb.mxu0 %v3410_v1 }
 0x113   :  { %2039 = vmatpush.bf16.msra.mxu3 %v3395_v0 }
 0x115   :  { %v1596_v3 = vpop.f32.mrf.mxu2  ;;  %v1572_v9 = vpop.f32.mrf.mxu0 }
 0x116   :  { %v1597_v4 = vadd.f32 %v1596_v3, %v1584_v2  ;;  %v1609_v7 = vpop.f32.mrf.mxu3  ;;  %v1585_v10 = vpop.f32.mrf.mxu1  ;;  %v3409_v2 = vld [vmem:[#allocation4 + $0x30] sm:$0xff]  ;;  %v3408_v3 = vld [vmem:[#allocation4 + $0x28] sm:$0xff] }
 0x117   :  { %2117 = vmatpush.bf16.msrb.mxu0 %v3409_v2 }
 0x118   :  { %v1610_v6 = vadd.f32 %v1609_v7, %v1597_v4  ;;  %v3407_v4 = vld [vmem:[#allocation4 + $0x20] sm:$0xff]  ;;  %v3406_v7 = vld [vmem:[#allocation4 + $0x18] sm:$0xff] }
 0x11a   :  { %v1718_v11 = vmul.f32 0.01, %v1610_v6 }
 0x11b   :  { %2118 = vmatpush.bf16.msrb.mxu0 %v3408_v3 }
 0x11c   :  { %v1721_v8 = vmax.f32 %v1610_v6, %v1718_v11 }
 0x11d   :  { %v1598_v12 = vpop.f32.mrf.mxu2 }
 0x11e   :  { %v1724_v13 = vpack.c.bf16 %v1721_v8, %v1721_v8  ;;  %v1611_v15 = vpop.f32.mrf.mxu3  ;;  %v3404_v12 = vld [vmem:[#allocation4 + $0x8] sm:$0xff] }
 0x11f   :  { %2119 = vmatpush.bf16.msrb.mxu0 %v3407_v4  ;;  %v3417_v15 = vld [vmem:[#allocation6 + $0x30] sm:$0xff] }
 0x120   :  { %1943 = vmatmul.bf16.vlgmr.msra.gmra.mxu1 %v1724_v13  ;;  %v3418_v13 = vld [vmem:[#allocation6 + $0x38] sm:$0xff] }
 0x121   :  { %2199 = vmatpush.bf16.msrb.mxu1 %v3418_v13 }
 0x123   :  { %2120 = vmatpush.bf16.msrb.mxu0 %v3406_v7 }
 0x125   :  { %2200 = vmatpush.bf16.msrb.mxu1 %v3417_v15 }
 0x127   :  { %2121 = vmatpush.bf16.msrb.mxu0 %v3405_v5 }
 0x129   :  { %2201 = vmatpush.bf16.msrb.mxu1 %v3416_v16 }
 0x12b   :  { %2122 = vmatpush.bf16.msrb.mxu0 %v3404_v12 }
 0x12d   :  { %v1622_v18 = vpop.f32.mrf.mxu0  ;;  %2202 = vmatpush.bf16.msrb.mxu1 %v3415_v17 }
 0x12e   :  { %v1635_v20 = vpop.f32.mrf.mxu1  ;;  %v1623_v27 = vadd.f32 %v1622_v18, %v349_v24  ;;  %v3414_v18 = vld [vmem:[#allocation6 + $0x18] sm:$0xff]  ;;  %v3412_v24 = vld [vmem:[#allocation6 + $0x8] sm:$0xff] }
 0x12f   :  { %2123 = vmatpush.bf16.msrb.mxu0 %v3403_v19 }
 0x130   :  { %v1636_v28 = vadd.f32 %v1635_v20, %v1623_v27  ;;  %v3413_v20 = vld [vmem:[#allocation6 + $0x10] sm:$0xff] }
 0x131   :  { %2203 = vmatpush.bf16.msrb.mxu1 %v3414_v18 }
 0x135   :  { %v1648_v41 = vpop.f32.mrf.mxu2  ;;  %v1624_v38 = vpop.f32.mrf.mxu0  ;;  %2204 = vmatpush.bf16.msrb.mxu1 %v3413_v20 }
 0x136   :  { %v1661_v44 = vpop.f32.mrf.mxu3  ;;  %v1637_v42 = vpop.f32.mrf.mxu1  ;;  %v1649_v29 = vadd.f32 %v1648_v41, %v1636_v28 }
 0x138   :  { %v1662_v30 = vadd.f32 %v1661_v44, %v1649_v29 }
 0x139   :  { %2205 = vmatpush.bf16.msrb.mxu1 %v3412_v24 }
 0x13d   :  { %v1650_v25 = vpop.f32.mrf.mxu2 }
 0x13e   :  { %v1663_v26 = vpop.f32.mrf.mxu3  ;;  %v3411_v25 = vld [vmem:[#allocation6] sm:$0xff] }
 0x13f   :  { %2206 = vmatpush.bf16.msrb.mxu1 %v3411_v25  ;;  %v3428_v26 = vld [vmem:[%s3761_s8] ss:$0 sm:$0xff] }
 0x14d   :  { %v1674_v31 = vpop.f32.mrf.mxu0 }
 0x14e   :  { %v1687_v32 = vpop.f32.mrf.mxu1  ;;  %v1675_v33 = vadd.f32 %v1674_v31, %v1662_v30 }
 0x150   :  { %v1688_v34 = vadd.f32 %v1687_v32, %v1675_v33  ;;  %v3429_v32 = vld [vmem:[%s3763_s10] ss:$0 sm:$0xff] }
 0x155   :  { %v1700_v35 = vpop.f32.mrf.mxu2  ;;  %v1676_v39 = vpop.f32.mrf.mxu0 }
 0x156   :  { %v1701_v36 = vadd.f32 %v1700_v35, %v1688_v34  ;;  %v1713_v37 = vpop.f32.mrf.mxu3  ;;  %v1689_v43 = vpop.f32.mrf.mxu1 }
 0x158   :  { %v1714_v45 = vadd.f32 %v1713_v37, %v1701_v36 }
 0x15a   :  { %v1719_v46 = vmul.f32 0.01, %v1714_v45 }
 0x15c   :  { %v1722_v47 = vmax.f32 %v1714_v45, %v1719_v46 }
 0x15d   :  { %v1702_v40 = vpop.f32.mrf.mxu2 }
 0x15e   :  { %v1725_v48 = vpack.c.bf16 %v1722_v47, %v1722_v47  ;;  %v1715_v49 = vpop.f32.mrf.mxu3 }
 0x160   :  { %1956 = vmatmul.bf16.vlgmr.msra.gmra.mxu2 %v1725_v48 }
 0x16d   :  { %v1931_v50 = vpop.f32.mrf.mxu0 }
 0x16e   :  { %v1932_v59 = vadd.f32 %v3426_v58, %v1931_v50 }
 0x175   :  { %v1933_v51 = vpop.f32.mrf.mxu0 }
 0x19d   :  { %v1944_v60 = vpop.f32.mrf.mxu1 }
 0x19e   :  { %v1945_v61 = vadd.f32 %v1944_v60, %v1932_v59 }
 0x1a5   :  { %v1946_v62 = vpop.f32.mrf.mxu1 }
 0x1e3   :  { %v1957_v6 = vpop.f32.mrf.mxu2 }
 0x1e4   :  { %v1958_v9 = vadd.f32 %v1957_v6, %v1945_v61 }
 0x1e6   :  { %v1961_v10 = vmul.f32 0.01, %v1958_v9 }
 0x1e8   :  { %v1962_v11 = vmax.f32 %v1958_v9, %v1961_v10 }
 0x1ea   :  { %v1963_v14 = vpack.c.bf16 %v1962_v11, %v1962_v11 }
 0x1eb   :  { %v1959_v8 = vpop.f32.mrf.mxu2 }
 0x1ec   :  { %2040 = vmatmul.bf16.vlgmr.msra.gmra.mxu3 %v1963_v14 }
 0x26f   :  { %v2041_v41 = vpop.f32.mrf.mxu3 }
 0x270   :  { %v2042_v44 = vadd.f32 %v3427_v21, %v2041_v41 }
 0x272   :  { %v2045_v22 = vmul.f32 0.01, %v2042_v44 }
 0x274   :  { %v2046_v38 = vmax.f32 %v2042_v44, %v2045_v22 }
 0x276   :  { %v2047_v42 = vpack.c.bf16 %v2046_v38, %v2046_v38 }
 0x277   :  { %v2043_v23 = vpop.f32.mrf.mxu3 }
 0x278   :  { %2124 = vmatmul.bf16.vlgmr.msrb.gmra.mxu0 %v2047_v42 }
 0x2f5   :  { %v2125_v27 = vpop.f32.mrf.mxu0 }
 0x2f6   :  { %v2126_v28 = vadd.f32 %v3428_v26, %v2125_v27 }
 0x2f8   :  { %v2129_v29 = vmax.f32 %v2126_v28, 0.0 }
 0x2fa   :  { %v2130_v30 = vpack.c.bf16 %v2129_v29, %v2129_v29 }
 0x2fc   :  { %2207 = vmatmul.bf16.vlgmr.msrb.gmra.mxu1 %v2130_v30 }
 0x2fd   :  { %v2127_v31 = vpop.f32.mrf.mxu0 }
 0x379   :  { %v2208_v33 = vpop.f32.mrf.mxu1 }
 0x37a   :  { %v2209_v34 = vadd.f32 %v3429_v32, %v2208_v33 }
 0x37c   :  { %2212 = vst [vmem:[%s3764_s11] sm:$0xff] %v2209_v34 }
 0x381   :  { %v2210_v35 = vpop.f32.mrf.mxu1 }
 0x382   :  { %2217 = vsyncpa [#allocation3], 1 }
 0x383   :  { %2218 = vsyncpa [#allocation5], 1 }

</bundles_post_ra>
